<compile_context>
chip_gen: v6e
topology: v6e:2x2x1
jax: 0.10.0
libtpu: 0.0.40
codegen_flags: <defaults>
</compile_context>

<pallas_src>
import functools

import numpy as np
import jax
import jax.numpy as jnp
from jax import lax
from jax.experimental import pallas as pl
from jax.experimental.pallas import tpu as pltpu


def _convblock_kernel(xt_ref, r_ref, wv_ref, bv_ref, sw_ref, sh_ref,
                      out_ref, acc_ref, *, pool_k):
    # Per grid step (b, t):
    #   xt_ref : (Tc*H, W)   shifted conv taps (rows = tap-in-chunk * H + h)
    #   r_ref  : (W, WC)     0/1 lane-replication matrix, WC = Cout*W (co-major)
    #   wv_ref : (Tc, WC)    per-tap weight rows (constant inside each co block)
    #   bv_ref : (1, WC)     bias row
    #   sw_ref : (WC, WoC)   0/1 stride-s lane gather of pool-window centers
    #   sh_ref : (Ho, H)     0/1 stride-s row  gather of pool-window centers
    #   out_ref: (Ho, WoC)   pooled output for this batch element
    #   acc_ref: (H, WC)     f32 conv accumulator (lives across the tap axis)
    t = pl.program_id(1)
    n_t = pl.num_programs(1)
    tc = wv_ref.shape[0]
    h = acc_ref.shape[0]
    wc = acc_ref.shape[1]
    half = (pool_k - 1) // 2

    # -- replicate the W-lane tap slabs across the Cout lane blocks ----------
    # (Tc*H, W) @ (W, Cout*W): exact gather (one nonzero per column, HIGHEST).
    xrep = jnp.dot(xt_ref[...], r_ref[...],
                   preferred_element_type=jnp.float32,
                   precision=lax.Precision.HIGHEST)        # (Tc*H, WC)

    # -- partial conv for this tap chunk: Tc lane-dense VPU broadcast-FMAs ---
    contrib = xrep[0:h] * wv_ref[pl.ds(0, 1), :]
    for k in range(1, tc):                                  # static unroll
        contrib += xrep[k * h:(k + 1) * h] * wv_ref[pl.ds(k, 1), :]

    @pl.when(t == 0)
    def _init():                                            # bias as acc init
        acc_ref[...] = jnp.broadcast_to(bv_ref[...], acc_ref.shape)

    acc_ref[...] += contrib

    # -- last tap chunk: ReLU + 3x3 / stride-2 max pool + store --------------
    @pl.when(t == n_t - 1)
    def _finalize():
        y = jnp.maximum(acc_ref[...], 0.0)                  # (H, WC)
        # In-window max along W: symmetric +/-k lane rolls (XLU) + VPU max.
        ymax = y
        for k in range(1, half + 1):
            ymax = jnp.maximum(ymax, pltpu.roll(y, k, axis=1))
            ymax = jnp.maximum(ymax, pltpu.roll(y, wc - k, axis=1))
        # Stride-s lane downsample (gather window centers), exact at HIGHEST.
        mw = jnp.dot(ymax, sw_ref[...],
                     preferred_element_type=jnp.float32,
                     precision=lax.Precision.HIGHEST)       # (H, WoC)
        # In-window max along H: symmetric +/-k sublane rolls + VPU max.
        mmax = mw
        for k in range(1, half + 1):
            mmax = jnp.maximum(mmax, pltpu.roll(mw, k, axis=0))
            mmax = jnp.maximum(mmax, pltpu.roll(mw, h - k, axis=0))
        # Stride-s row downsample.
        out = jnp.dot(sh_ref[...], mmax,
                      preferred_element_type=jnp.float32,
                      precision=lax.Precision.HIGHEST)      # (Ho, WoC)
        out_ref[...] = out.astype(out_ref.dtype)


@functools.partial(jax.jit,
                   static_argnames=("stride", "padding", "pool_k", "pool_s"))
def conv_block(x_nchw, w_oihw, bias, *, stride=1, padding=1,
               pool_k=3, pool_s=2):
    N, Cin, H_in, W_in = x_nchw.shape
    Cout, Cin_w, KH, KW = w_oihw.shape
    assert Cin_w == Cin
    H = (H_in + 2 * padding - KH) // stride + 1             # conv output
    W = (W_in + 2 * padding - KW) // stride + 1
    Ho = (H - pool_k) // pool_s + 1                         # pool output (VALID)
    Wo = (W - pool_k) // pool_s + 1
    assert Ho >= 1 and Wo >= 1
    # Symmetric-window rolls need an odd pool kernel (3 here).
    # TODO(synk): even pool kernels would need one-sided shifts instead.
    assert pool_k % 2 == 1
    T = KH * KW * Cin
    WC, WoC = W * Cout, Wo * Cout
    half = (pool_k - 1) // 2

    # Tap-chunking: reduction axis of the grid (4-8 total steps with batch).
    KT = next(k for k in (2, 3, 4, 6, 9, 1) if T % k == 0)
    Tc = T // KT

    # ---------------- host-side packing (fused under this jit) -------------
    f32 = jnp.float32
    x_nhwc = jnp.transpose(x_nchw, (0, 2, 3, 1)).astype(f32)
    x_pad = jnp.pad(
        x_nhwc, ((0, 0), (padding, padding), (padding, padding), (0, 0)))

    # shifted taps, NO Cout broadcast: xt[n, chunk, k*H + h, w]
    slabs = [x_pad[:,
                   kh:kh + stride * (H - 1) + 1:stride,
                   kw:kw + stride * (W - 1) + 1:stride, :]
             for kh in range(KH) for kw in range(KW)]
    patches = jnp.stack(slabs, axis=0)                      # (KH*KW, N, H, W, Cin)
    xt = jnp.transpose(patches, (1, 0, 4, 2, 3))            # (N, KH*KW, Cin, H, W)
    xt = xt.reshape(N, KT, Tc * H, W)                       # tap index t = p*Cin+ci

    # per-tap weight rows in co-major lane order: wv[t, co*W + w] = w[co,ci,kh,kw]
    w_hwio = jnp.transpose(w_oihw, (2, 3, 1, 0)).astype(f32)  # (KH, KW, Cin, Cout)
    wgt = w_hwio.reshape(T, Cout)
    wv = jnp.repeat(wgt, W, axis=1).reshape(KT, Tc, WC)
    bv = jnp.repeat(bias.astype(f32), W)[None, :]           # (1, WC)

    # constant 0/1 matrices (built at trace time):
    #   rep : lane replication  rep[w, co*W + w] = 1
    #   sw  : W downsample gather of window centers
    #   sh  : H downsample gather of window centers
    rep = np.tile(np.eye(W, dtype=np.float32), (1, Cout))   # (W, WC)
    sw = np.zeros((WC, WoC), np.float32)
    for co in range(Cout):
        for j in range(Wo):
            sw[co * W + pool_s * j + half, co * Wo + j] = 1.0
    sh = np.zeros((Ho, H), np.float32)
    for i in range(Ho):
        sh[i, pool_s * i + half] = 1.0
    rep = jnp.asarray(rep)
    sw = jnp.asarray(sw)
    sh = jnp.asarray(sh)

    # ---------------- pipelined Pallas call ---------------------------------
    kernel = functools.partial(_convblock_kernel, pool_k=pool_k)
    out3 = pl.pallas_call(
        kernel,
        out_shape=jax.ShapeDtypeStruct((N, Ho, WoC), x_nchw.dtype),
        grid=(N, KT),
        in_specs=[
            pl.BlockSpec((None, None, Tc * H, W), lambda b, t: (b, t, 0, 0)),
            pl.BlockSpec((W, WC),                 lambda b, t: (0, 0)),
            pl.BlockSpec((None, Tc, WC),          lambda b, t: (t, 0, 0)),
            pl.BlockSpec((1, WC),                 lambda b, t: (0, 0)),
            pl.BlockSpec((WC, WoC),               lambda b, t: (0, 0)),
            pl.BlockSpec((Ho, H),                 lambda b, t: (0, 0)),
        ],
        out_specs=pl.BlockSpec((None, Ho, WoC), lambda b, t: (b, 0, 0)),
        scratch_shapes=[pltpu.VMEM((H, WC), jnp.float32)],
        compiler_params=pltpu.CompilerParams(
            dimension_semantics=("parallel", "arbitrary")),
    )(xt, rep, wv, bv, sw, sh)

    # lane-packed (N, Ho, Cout*Wo) slab -> NCHW
    out = out3.reshape(N, Ho, Cout, Wo)
    return jnp.transpose(out, (0, 2, 1, 3))


def _reference(x, w, b, *, stride=1, padding=1, pool_k=3, pool_s=2):
    y = jax.lax.conv_general_dilated(
        x, w, window_strides=(stride, stride),
        padding=((padding, padding), (padding, padding)),
        dimension_numbers=("NCHW", "OIHW", "NCHW"))
    y = y + b[None, :, None, None]
    y = jnp.maximum(y, 0.0)
    y = jax.lax.reduce_window(
        y, -jnp.inf, jax.lax.max,
        window_dimensions=(1, 1, pool_k, pool_k),
        window_strides=(1, 1, pool_s, pool_s),
        padding="VALID")
    return y


if __name__ == "__main__":
    # ConvBlock(in_channels=4, out_channels=8, kernel_size=3, stride=1, padding=1)
    N, Cin, Cout, HW, K = 2, 4, 8, 16, 3

    key = jax.random.PRNGKey(0)
    kx, kw, kb = jax.random.split(key, 3)
    x = jax.random.normal(kx, (N, Cin, HW, HW), dtype=jnp.float32)

    # Deterministic PyTorch-style uniform init: U(-1/sqrt(fan_in), 1/sqrt(fan_in))
    fan_in = Cin * K * K
    bound = 1.0 / np.sqrt(fan_in)
    w = jax.random.uniform(kw, (Cout, Cin, K, K), jnp.float32, -bound, bound)
    b = jax.random.uniform(kb, (Cout,), jnp.float32, -bound, bound)

    out = conv_block(x, w, b, stride=1, padding=1, pool_k=3, pool_s=2)
    out = jax.block_until_ready(out)
    assert out.shape == (N, Cout, 7, 7), out.shape

    ref = jax.block_until_ready(_reference(x, w, b))
    np.testing.assert_allclose(np.asarray(out), np.asarray(ref),
                               rtol=2e-3, atol=2e-3)
    print("KERNEL_OK")
</pallas_src>

<mosaic_0001>
module attributes {stable_mosaic.version = 11 : i64} {
  func.func @_convblock_kernel(%arg0: i32, %arg1: i32, %arg2: memref<1x1x288x16xf32, #tpu.memory_space<vmem>>, %arg3: memref<16x128xf32, #tpu.memory_space<vmem>>, %arg4: memref<1x18x128xf32, #tpu.memory_space<vmem>>, %arg5: memref<1x128xf32, #tpu.memory_space<vmem>>, %arg6: memref<128x56xf32, #tpu.memory_space<vmem>>, %arg7: memref<7x16xf32, #tpu.memory_space<vmem>>, %arg8: memref<1x7x56xf32, #tpu.memory_space<vmem>>, %arg9: memref<16x128xf32, #tpu.memory_space<vmem>>) attributes {dimension_semantics = [#tpu.dimension_semantics<parallel>, #tpu.dimension_semantics<arbitrary>], iteration_bounds = array<i64: 2, 2>, scalar_prefetch = 0 : i64, scratch_operands = 1 : i64, tpu.core_type = #tpu.core_type<tc>, window_params = [{transform_indices = @transform_0, window_bounds = array<i64: 1, 1, 288, 16>}, {pipeline_mode = #tpu.pipeline_mode<synchronous>, transform_indices = @transform_1, window_bounds = array<i64: 16, 128>}, {transform_indices = @transform_2, window_bounds = array<i64: 1, 18, 128>}, {pipeline_mode = #tpu.pipeline_mode<synchronous>, transform_indices = @transform_3, window_bounds = array<i64: 1, 128>}, {pipeline_mode = #tpu.pipeline_mode<synchronous>, transform_indices = @transform_4, window_bounds = array<i64: 128, 56>}, {pipeline_mode = #tpu.pipeline_mode<synchronous>, transform_indices = @transform_5, window_bounds = array<i64: 7, 16>}, {transform_indices = @transform_6, window_bounds = array<i64: 1, 7, 56>}]} {
    %c0 = arith.constant 0 : index
    %c0_0 = arith.constant 0 : index
    %c0_1 = arith.constant 0 : index
    %c0_2 = arith.constant 0 : index
    %0 = vector.load %arg2[%c0, %c0_0, %c0_1, %c0_2] : memref<1x1x288x16xf32, #tpu.memory_space<vmem>>, vector<1x1x288x16xf32>
    %1 = vector.shape_cast %0 : vector<1x1x288x16xf32> to vector<288x16xf32>
    %c0_3 = arith.constant 0 : index
    %c0_4 = arith.constant 0 : index
    %2 = vector.load %arg3[%c0_3, %c0_4] : memref<16x128xf32, #tpu.memory_space<vmem>>, vector<16x128xf32>
    %cst = arith.constant dense<0.000000e+00> : vector<288x128xf32>
    %3 = tpu.matmul %1, %2, %cst {dimension_numbers = #tpu.dot_dimension_numbers<[1], [0], [0], [1], [0, 0, 1, 1], [], []>, precision = #tpu.contract_precision<fp32>} : vector<288x16xf32>, vector<16x128xf32>, vector<288x128xf32> -> vector<288x128xf32>
    %4 = vector.extract_strided_slice %3 {offsets = [0, 0], sizes = [16, 128], strides = [1, 1]} : vector<288x128xf32> to vector<16x128xf32>
    %c0_5 = arith.constant 0 : index
    %c0_6 = arith.constant 0 : index
    %c0_7 = arith.constant 0 : index
    %5 = vector.load %arg4[%c0_5, %c0_6, %c0_7] : memref<1x18x128xf32, #tpu.memory_space<vmem>>, vector<1x1x128xf32>
    %6 = vector.shape_cast %5 : vector<1x1x128xf32> to vector<1x128xf32>
    %7 = vector.broadcast %6 : vector<1x128xf32> to vector<16x128xf32>
    %8 = arith.mulf %4, %7 : vector<16x128xf32>
    %9 = vector.extract_strided_slice %3 {offsets = [16, 0], sizes = [16, 128], strides = [1, 1]} : vector<288x128xf32> to vector<16x128xf32>
    %c0_8 = arith.constant 0 : index
    %c1 = arith.constant 1 : index
    %c0_9 = arith.constant 0 : index
    %10 = vector.load %arg4[%c0_8, %c1, %c0_9] : memref<1x18x128xf32, #tpu.memory_space<vmem>>, vector<1x1x128xf32>
    %11 = vector.shape_cast %10 : vector<1x1x128xf32> to vector<1x128xf32>
    %12 = vector.broadcast %11 : vector<1x128xf32> to vector<16x128xf32>
    %13 = arith.mulf %9, %12 : vector<16x128xf32>
    %14 = arith.addf %8, %13 : vector<16x128xf32>
    %15 = vector.extract_strided_slice %3 {offsets = [32, 0], sizes = [16, 128], strides = [1, 1]} : vector<288x128xf32> to vector<16x128xf32>
    %c0_10 = arith.constant 0 : index
    %c2 = arith.constant 2 : index
    %c0_11 = arith.constant 0 : index
    %16 = vector.load %arg4[%c0_10, %c2, %c0_11] : memref<1x18x128xf32, #tpu.memory_space<vmem>>, vector<1x1x128xf32>
    %17 = vector.shape_cast %16 : vector<1x1x128xf32> to vector<1x128xf32>
    %18 = vector.broadcast %17 : vector<1x128xf32> to vector<16x128xf32>
    %19 = arith.mulf %15, %18 : vector<16x128xf32>
    %20 = arith.addf %14, %19 : vector<16x128xf32>
    %21 = vector.extract_strided_slice %3 {offsets = [48, 0], sizes = [16, 128], strides = [1, 1]} : vector<288x128xf32> to vector<16x128xf32>
    %c0_12 = arith.constant 0 : index
    %c3 = arith.constant 3 : index
    %c0_13 = arith.constant 0 : index
    %22 = vector.load %arg4[%c0_12, %c3, %c0_13] : memref<1x18x128xf32, #tpu.memory_space<vmem>>, vector<1x1x128xf32>
    %23 = vector.shape_cast %22 : vector<1x1x128xf32> to vector<1x128xf32>
    %24 = vector.broadcast %23 : vector<1x128xf32> to vector<16x128xf32>
    %25 = arith.mulf %21, %24 : vector<16x128xf32>
    %26 = arith.addf %20, %25 : vector<16x128xf32>
    %27 = vector.extract_strided_slice %3 {offsets = [64, 0], sizes = [16, 128], strides = [1, 1]} : vector<288x128xf32> to vector<16x128xf32>
    %c0_14 = arith.constant 0 : index
    %c4 = arith.constant 4 : index
    %c0_15 = arith.constant 0 : index
    %28 = vector.load %arg4[%c0_14, %c4, %c0_15] : memref<1x18x128xf32, #tpu.memory_space<vmem>>, vector<1x1x128xf32>
    %29 = vector.shape_cast %28 : vector<1x1x128xf32> to vector<1x128xf32>
    %30 = vector.broadcast %29 : vector<1x128xf32> to vector<16x128xf32>
    %31 = arith.mulf %27, %30 : vector<16x128xf32>
    %32 = arith.addf %26, %31 : vector<16x128xf32>
    %33 = vector.extract_strided_slice %3 {offsets = [80, 0], sizes = [16, 128], strides = [1, 1]} : vector<288x128xf32> to vector<16x128xf32>
    %c0_16 = arith.constant 0 : index
    %c5 = arith.constant 5 : index
    %c0_17 = arith.constant 0 : index
    %34 = vector.load %arg4[%c0_16, %c5, %c0_17] : memref<1x18x128xf32, #tpu.memory_space<vmem>>, vector<1x1x128xf32>
    %35 = vector.shape_cast %34 : vector<1x1x128xf32> to vector<1x128xf32>
    %36 = vector.broadcast %35 : vector<1x128xf32> to vector<16x128xf32>
    %37 = arith.mulf %33, %36 : vector<16x128xf32>
    %38 = arith.addf %32, %37 : vector<16x128xf32>
    %39 = vector.extract_strided_slice %3 {offsets = [96, 0], sizes = [16, 128], strides = [1, 1]} : vector<288x128xf32> to vector<16x128xf32>
    %c0_18 = arith.constant 0 : index
    %c6 = arith.constant 6 : index
    %c0_19 = arith.constant 0 : index
    %40 = vector.load %arg4[%c0_18, %c6, %c0_19] : memref<1x18x128xf32, #tpu.memory_space<vmem>>, vector<1x1x128xf32>
    %41 = vector.shape_cast %40 : vector<1x1x128xf32> to vector<1x128xf32>
    %42 = vector.broadcast %41 : vector<1x128xf32> to vector<16x128xf32>
    %43 = arith.mulf %39, %42 : vector<16x128xf32>
    %44 = arith.addf %38, %43 : vector<16x128xf32>
    %45 = vector.extract_strided_slice %3 {offsets = [112, 0], sizes = [16, 128], strides = [1, 1]} : vector<288x128xf32> to vector<16x128xf32>
    %c0_20 = arith.constant 0 : index
    %c7 = arith.constant 7 : index
    %c0_21 = arith.constant 0 : index
    %46 = vector.load %arg4[%c0_20, %c7, %c0_21] : memref<1x18x128xf32, #tpu.memory_space<vmem>>, vector<1x1x128xf32>
    %47 = vector.shape_cast %46 : vector<1x1x128xf32> to vector<1x128xf32>
    %48 = vector.broadcast %47 : vector<1x128xf32> to vector<16x128xf32>
    %49 = arith.mulf %45, %48 : vector<16x128xf32>
    %50 = arith.addf %44, %49 : vector<16x128xf32>
    %51 = vector.extract_strided_slice %3 {offsets = [128, 0], sizes = [16, 128], strides = [1, 1]} : vector<288x128xf32> to vector<16x128xf32>
    %c0_22 = arith.constant 0 : index
    %c8 = arith.constant 8 : index
    %c0_23 = arith.constant 0 : index
    %52 = vector.load %arg4[%c0_22, %c8, %c0_23] : memref<1x18x128xf32, #tpu.memory_space<vmem>>, vector<1x1x128xf32>
    %53 = vector.shape_cast %52 : vector<1x1x128xf32> to vector<1x128xf32>
    %54 = vector.broadcast %53 : vector<1x128xf32> to vector<16x128xf32>
    %55 = arith.mulf %51, %54 : vector<16x128xf32>
    %56 = arith.addf %50, %55 : vector<16x128xf32>
    %57 = vector.extract_strided_slice %3 {offsets = [144, 0], sizes = [16, 128], strides = [1, 1]} : vector<288x128xf32> to vector<16x128xf32>
    %c0_24 = arith.constant 0 : index
    %c9 = arith.constant 9 : index
    %c0_25 = arith.constant 0 : index
    %58 = vector.load %arg4[%c0_24, %c9, %c0_25] : memref<1x18x128xf32, #tpu.memory_space<vmem>>, vector<1x1x128xf32>
    %59 = vector.shape_cast %58 : vector<1x1x128xf32> to vector<1x128xf32>
    %60 = vector.broadcast %59 : vector<1x128xf32> to vector<16x128xf32>
    %61 = arith.mulf %57, %60 : vector<16x128xf32>
    %62 = arith.addf %56, %61 : vector<16x128xf32>
    %63 = vector.extract_strided_slice %3 {offsets = [160, 0], sizes = [16, 128], strides = [1, 1]} : vector<288x128xf32> to vector<16x128xf32>
    %c0_26 = arith.constant 0 : index
    %c10 = arith.constant 10 : index
    %c0_27 = arith.constant 0 : index
    %64 = vector.load %arg4[%c0_26, %c10, %c0_27] : memref<1x18x128xf32, #tpu.memory_space<vmem>>, vector<1x1x128xf32>
    %65 = vector.shape_cast %64 : vector<1x1x128xf32> to vector<1x128xf32>
    %66 = vector.broadcast %65 : vector<1x128xf32> to vector<16x128xf32>
    %67 = arith.mulf %63, %66 : vector<16x128xf32>
    %68 = arith.addf %62, %67 : vector<16x128xf32>
    %69 = vector.extract_strided_slice %3 {offsets = [176, 0], sizes = [16, 128], strides = [1, 1]} : vector<288x128xf32> to vector<16x128xf32>
    %c0_28 = arith.constant 0 : index
    %c11 = arith.constant 11 : index
    %c0_29 = arith.constant 0 : index
    %70 = vector.load %arg4[%c0_28, %c11, %c0_29] : memref<1x18x128xf32, #tpu.memory_space<vmem>>, vector<1x1x128xf32>
    %71 = vector.shape_cast %70 : vector<1x1x128xf32> to vector<1x128xf32>
    %72 = vector.broadcast %71 : vector<1x128xf32> to vector<16x128xf32>
    %73 = arith.mulf %69, %72 : vector<16x128xf32>
    %74 = arith.addf %68, %73 : vector<16x128xf32>
    %75 = vector.extract_strided_slice %3 {offsets = [192, 0], sizes = [16, 128], strides = [1, 1]} : vector<288x128xf32> to vector<16x128xf32>
    %c0_30 = arith.constant 0 : index
    %c12 = arith.constant 12 : index
    %c0_31 = arith.constant 0 : index
    %76 = vector.load %arg4[%c0_30, %c12, %c0_31] : memref<1x18x128xf32, #tpu.memory_space<vmem>>, vector<1x1x128xf32>
    %77 = vector.shape_cast %76 : vector<1x1x128xf32> to vector<1x128xf32>
    %78 = vector.broadcast %77 : vector<1x128xf32> to vector<16x128xf32>
    %79 = arith.mulf %75, %78 : vector<16x128xf32>
    %80 = arith.addf %74, %79 : vector<16x128xf32>
    %81 = vector.extract_strided_slice %3 {offsets = [208, 0], sizes = [16, 128], strides = [1, 1]} : vector<288x128xf32> to vector<16x128xf32>
    %c0_32 = arith.constant 0 : index
    %c13 = arith.constant 13 : index
    %c0_33 = arith.constant 0 : index
    %82 = vector.load %arg4[%c0_32, %c13, %c0_33] : memref<1x18x128xf32, #tpu.memory_space<vmem>>, vector<1x1x128xf32>
    %83 = vector.shape_cast %82 : vector<1x1x128xf32> to vector<1x128xf32>
    %84 = vector.broadcast %83 : vector<1x128xf32> to vector<16x128xf32>
    %85 = arith.mulf %81, %84 : vector<16x128xf32>
    %86 = arith.addf %80, %85 : vector<16x128xf32>
    %87 = vector.extract_strided_slice %3 {offsets = [224, 0], sizes = [16, 128], strides = [1, 1]} : vector<288x128xf32> to vector<16x128xf32>
    %c0_34 = arith.constant 0 : index
    %c14 = arith.constant 14 : index
    %c0_35 = arith.constant 0 : index
    %88 = vector.load %arg4[%c0_34, %c14, %c0_35] : memref<1x18x128xf32, #tpu.memory_space<vmem>>, vector<1x1x128xf32>
    %89 = vector.shape_cast %88 : vector<1x1x128xf32> to vector<1x128xf32>
    %90 = vector.broadcast %89 : vector<1x128xf32> to vector<16x128xf32>
    %91 = arith.mulf %87, %90 : vector<16x128xf32>
    %92 = arith.addf %86, %91 : vector<16x128xf32>
    %93 = vector.extract_strided_slice %3 {offsets = [240, 0], sizes = [16, 128], strides = [1, 1]} : vector<288x128xf32> to vector<16x128xf32>
    %c0_36 = arith.constant 0 : index
    %c15 = arith.constant 15 : index
    %c0_37 = arith.constant 0 : index
    %94 = vector.load %arg4[%c0_36, %c15, %c0_37] : memref<1x18x128xf32, #tpu.memory_space<vmem>>, vector<1x1x128xf32>
    %95 = vector.shape_cast %94 : vector<1x1x128xf32> to vector<1x128xf32>
    %96 = vector.broadcast %95 : vector<1x128xf32> to vector<16x128xf32>
    %97 = arith.mulf %93, %96 : vector<16x128xf32>
    %98 = arith.addf %92, %97 : vector<16x128xf32>
    %99 = vector.extract_strided_slice %3 {offsets = [256, 0], sizes = [16, 128], strides = [1, 1]} : vector<288x128xf32> to vector<16x128xf32>
    %c0_38 = arith.constant 0 : index
    %c16 = arith.constant 16 : index
    %c0_39 = arith.constant 0 : index
    %100 = vector.load %arg4[%c0_38, %c16, %c0_39] : memref<1x18x128xf32, #tpu.memory_space<vmem>>, vector<1x1x128xf32>
    %101 = vector.shape_cast %100 : vector<1x1x128xf32> to vector<1x128xf32>
    %102 = vector.broadcast %101 : vector<1x128xf32> to vector<16x128xf32>
    %103 = arith.mulf %99, %102 : vector<16x128xf32>
    %104 = arith.addf %98, %103 : vector<16x128xf32>
    %105 = vector.extract_strided_slice %3 {offsets = [272, 0], sizes = [16, 128], strides = [1, 1]} : vector<288x128xf32> to vector<16x128xf32>
    %c0_40 = arith.constant 0 : index
    %c17 = arith.constant 17 : index
    %c0_41 = arith.constant 0 : index
    %106 = vector.load %arg4[%c0_40, %c17, %c0_41] : memref<1x18x128xf32, #tpu.memory_space<vmem>>, vector<1x1x128xf32>
    %107 = vector.shape_cast %106 : vector<1x1x128xf32> to vector<1x128xf32>
    %108 = vector.broadcast %107 : vector<1x128xf32> to vector<16x128xf32>
    %109 = arith.mulf %105, %108 : vector<16x128xf32>
    %110 = arith.addf %104, %109 : vector<16x128xf32>
    %c0_i32 = arith.constant 0 : i32
    %111 = arith.cmpi eq, %arg1, %c0_i32 : i32
    %112 = arith.extui %111 : i1 to i32
    %c0_i32_42 = arith.constant 0 : i32
    %113 = arith.cmpi ne, %112, %c0_i32_42 : i32
    scf.if %113 {
      %c0_48 = arith.constant 0 : index
      %c0_49 = arith.constant 0 : index
      %120 = vector.load %arg5[%c0_48, %c0_49] : memref<1x128xf32, #tpu.memory_space<vmem>>, vector<1x128xf32>
      %121 = vector.shape_cast %120 : vector<1x128xf32> to vector<1x128xf32>
      %122 = vector.broadcast %121 : vector<1x128xf32> to vector<16x128xf32>
      %c0_50 = arith.constant 0 : index
      %c0_51 = arith.constant 0 : index
      %123 = vector.load %arg9[%c0_50, %c0_51] : memref<16x128xf32, #tpu.memory_space<vmem>>, vector<16x128xf32>
      tpu.vector_store %arg9[%c0_50, %c0_51], %122 {strides = array<i32>} : memref<16x128xf32, #tpu.memory_space<vmem>>, vector<16x128xf32>,
    } else {
    }
    %c0_43 = arith.constant 0 : index
    %c0_44 = arith.constant 0 : index
    %114 = vector.load %arg9[%c0_43, %c0_44] : memref<16x128xf32, #tpu.memory_space<vmem>>, vector<16x128xf32>
    %115 = arith.addf %114, %110 : vector<16x128xf32>
    %c0_45 = arith.constant 0 : index
    %c0_46 = arith.constant 0 : index
    %116 = vector.load %arg9[%c0_45, %c0_46] : memref<16x128xf32, #tpu.memory_space<vmem>>, vector<16x128xf32>
    tpu.vector_store %arg9[%c0_45, %c0_46], %115 {strides = array<i32>} : memref<16x128xf32, #tpu.memory_space<vmem>>, vector<16x128xf32>,
    %c1_i32 = arith.constant 1 : i32
    %117 = arith.cmpi eq, %arg1, %c1_i32 : i32
    %118 = arith.extui %117 : i1 to i32
    %c0_i32_47 = arith.constant 0 : i32
    %119 = arith.cmpi ne, %118, %c0_i32_47 : i32
    scf.if %119 {
      %c0_48 = arith.constant 0 : index
      %c0_49 = arith.constant 0 : index
      %120 = vector.load %arg9[%c0_48, %c0_49] : memref<16x128xf32, #tpu.memory_space<vmem>>, vector<16x128xf32>
      %cst_50 = arith.constant 0.000000e+00 : f32
      %121 = vector.broadcast %cst_50 : f32 to vector<16x128xf32>
      %122 = arith.maximumf %120, %121 : vector<16x128xf32>
      %c1_i32_51 = arith.constant 1 : i32
      %123 = tpu.dynamic_rotate %122 by %c1_i32_51 dim 1 : vector<16x128xf32>, i32 -> vector<16x128xf32>
      %124 = arith.maximumf %122, %123 : vector<16x128xf32>
      %c127_i32 = arith.constant 127 : i32
      %125 = tpu.dynamic_rotate %122 by %c127_i32 dim 1 : vector<16x128xf32>, i32 -> vector<16x128xf32>
      %126 = arith.maximumf %124, %125 : vector<16x128xf32>
      %c0_52 = arith.constant 0 : index
      %c0_53 = arith.constant 0 : index
      %127 = vector.load %arg6[%c0_52, %c0_53] : memref<128x56xf32, #tpu.memory_space<vmem>>, vector<128x56xf32>
      %cst_54 = arith.constant dense<0.000000e+00> : vector<16x56xf32>
      %128 = tpu.matmul %126, %127, %cst_54 {dimension_numbers = #tpu.dot_dimension_numbers<[1], [0], [0], [1], [0, 0, 1, 1], [], []>, precision = #tpu.contract_precision<fp32>} : vector<16x128xf32>, vector<128x56xf32>, vector<16x56xf32> -> vector<16x56xf32>
      %c1_i32_55 = arith.constant 1 : i32
      %129 = tpu.dynamic_rotate %128 by %c1_i32_55 dim 0 : vector<16x56xf32>, i32 -> vector<16x56xf32>
      %130 = arith.maximumf %128, %129 : vector<16x56xf32>
      %c15_i32 = arith.constant 15 : i32
      %131 = tpu.dynamic_rotate %128 by %c15_i32 dim 0 : vector<16x56xf32>, i32 -> vector<16x56xf32>
      %132 = arith.maximumf %130, %131 : vector<16x56xf32>
      %c0_56 = arith.constant 0 : index
      %c0_57 = arith.constant 0 : index
      %133 = vector.load %arg7[%c0_56, %c0_57] : memref<7x16xf32, #tpu.memory_space<vmem>>, vector<7x16xf32>
      %cst_58 = arith.constant dense<0.000000e+00> : vector<7x56xf32>
      %134 = tpu.matmul %133, %132, %cst_58 {dimension_numbers = #tpu.dot_dimension_numbers<[1], [0], [0], [1], [0, 0, 1, 1], [], []>, precision = #tpu.contract_precision<fp32>} : vector<7x16xf32>, vector<16x56xf32>, vector<7x56xf32> -> vector<7x56xf32>
      %c0_59 = arith.constant 0 : index
      %c0_60 = arith.constant 0 : index
      %c0_61 = arith.constant 0 : index
      %135 = vector.load %arg8[%c0_59, %c0_60, %c0_61] : memref<1x7x56xf32, #tpu.memory_space<vmem>>, vector<1x7x56xf32>
      %136 = vector.shape_cast %135 : vector<1x7x56xf32> to vector<7x56xf32>
      %137 = vector.shape_cast %134 : vector<7x56xf32> to vector<1x7x56xf32>
      tpu.vector_store %arg8[%c0_59, %c0_60, %c0_61], %137 {strides = array<i32>} : memref<1x7x56xf32, #tpu.memory_space<vmem>>, vector<1x7x56xf32>,
    } else {
    }
    return
  }
  func.func @transform_0(%arg0: i32, %arg1: i32) -> (i32, i32, i32, i32) {
    %c0_i32 = arith.constant 0 : i32
    %c0_i32_0 = arith.constant 0 : i32
    %c0_i32_1 = arith.constant 0 : i32
    return %arg0, %arg1, %c0_i32, %c0_i32_0 : i32, i32, i32, i32
  }
  func.func @transform_1(%arg0: i32, %arg1: i32) -> (i32, i32) {
    %c0_i32 = arith.constant 0 : i32
    %c0_i32_0 = arith.constant 0 : i32
    %c0_i32_1 = arith.constant 0 : i32
    return %c0_i32, %c0_i32_0 : i32, i32
  }
  func.func @transform_2(%arg0: i32, %arg1: i32) -> (i32, i32, i32) {
    %c0_i32 = arith.constant 0 : i32
    %c0_i32_0 = arith.constant 0 : i32
    %c0_i32_1 = arith.constant 0 : i32
    return %arg1, %c0_i32, %c0_i32_0 : i32, i32, i32
  }
  func.func @transform_3(%arg0: i32, %arg1: i32) -> (i32, i32) {
    %c0_i32 = arith.constant 0 : i32
    %c0_i32_0 = arith.constant 0 : i32
    %c0_i32_1 = arith.constant 0 : i32
    return %c0_i32, %c0_i32_0 : i32, i32
  }
  func.func @transform_4(%arg0: i32, %arg1: i32) -> (i32, i32) {
    %c0_i32 = arith.constant 0 : i32
    %c0_i32_0 = arith.constant 0 : i32
    %c0_i32_1 = arith.constant 0 : i32
    return %c0_i32, %c0_i32_0 : i32, i32
  }
  func.func @transform_5(%arg0: i32, %arg1: i32) -> (i32, i32) {
    %c0_i32 = arith.constant 0 : i32
    %c0_i32_0 = arith.constant 0 : i32
    %c0_i32_1 = arith.constant 0 : i32
    return %c0_i32, %c0_i32_0 : i32, i32
  }
  func.func @transform_6(%arg0: i32, %arg1: i32) -> (i32, i32, i32) {
    %c0_i32 = arith.constant 0 : i32
    %c0_i32_0 = arith.constant 0 : i32
    %c0_i32_1 = arith.constant 0 : i32
    return %arg0, %c0_i32, %c0_i32_0 : i32, i32, i32
  }
}

</mosaic_0001>

<bundles_post_ra>
// kernel: conv_block.1
= control target key start
LH: loop header
LB: loop body
LE: loop exit
PB: predicated region body
PF: predicated region fallthrough
CT: control target
= control target key end

     0   :  { %s4983_s21 = smov 0   ;;  %s4985_s22 = smov 0   ;;  %s6378_s0 = inlined_call_operand.vmem [shape: f32[2,2,288,16], index: 0, kind: input, shape index: {}]   ;;  %s6379_s1 = inlined_call_operand.vmem [shape: f32[16,128], index: 1, kind: input, shape index: {}]   ;;  %s6380_s2 = inlined_call_operand.vmem [shape: f32[2,18,128], index: 2, kind: input, shape index: {}]   ;;  %s6381_s3 = inlined_call_operand.vmem [shape: f32[1,128], index: 3, kind: input, shape index: {}]   ;;  %s6382_s4 = inlined_call_operand.vmem [shape: f32[128,56], index: 4, kind: input, shape index: {}]   ;;  %s6383_s5 = inlined_call_operand.vmem [shape: f32[7,16], index: 5, kind: input, shape index: {}]   ;;  %s6384_s6 = inlined_call_operand.vmem [shape: f32[2,7,56], index: 6, kind: output, shape index: {}]  }
   0x1   :  { %s4987_s23 = smov 0   ;;  %s4989_s24 = smov 0  }
   0x2   :  { %s4991_s25 = smov 0  }
   0x3 LB: > { %s25_s26 = sadd.s32 1, %s4934_s23  ;;  %s28_s27 = sadd.s32 1, %s4938_s24  ;;  %s4942_s25 = sphi %s4991_s25, %s16_s25   ;;  %s4938_s24 = sphi %s4989_s24, %s6552_s24   ;;  %s4934_s23 = sphi %s4987_s23, %s6551_s23   ;;  %s4930_s22 = sphi %s4985_s22, %s6550_s22   ;;  %s4926_s21 = sphi %s4983_s21, %s6549_s21  }
   0x4   : > { %p26_p0 = scmp.ge.s32.totalorder %s25_s26, 2  ;;  %p3876_p1 = scmp.ge.s32.totalorder %s4942_s25, 1 }
   0x5   : > { %p240_p2 = scmp.lt.s32.totalorder %s4942_s25, 5 }
   0x6   : > { %s6554_s26 = smov (%p26_p0, %s25_s26), 0  ;;  %s6556_s27 = smov (!%p26_p0, %s28_s27), %s4938_s24 }
   0x7   : > { %p241_p3 = pnand %p3876_p1, %p240_p2  ;;  %p30_p4 = scmp.ge.s32.totalorder %s6556_s27, 2 }
   0x9   : > { %s6558_s27 = smov (%p30_p4, %s6556_s27), 0  ;;  %244 = sbr.rel (%p241_p3) target bundleno = 1094 (0x446), region = 44 }
   0xe   : > { %v333_v0 = vld [vmem:[%s6379_s1 + $0x8] sm:$0xff]  ;;  %v332_v1 = vld [vmem:[%s6379_s1] sm:$0xff]  ;;  %p278_p5 = scmp.lt.s32.totalorder %s4930_s22, 1  ;;  %p280_p6 = scmp.lt.s32.totalorder %s4926_s21, 1  ;;  %vm334_vm0 = vcmask 130048  }
   0xf   : > { %v5022_v2 = vand.u32 4294901760, %v333_v0  ;;  %v5024_v3 = vand.u32 4294901760, %v332_v1  ;;  %p3898_p7 = scmp.ne.s32.totalorder %s4926_s21, 0 }
  0x10   : > { %s6560_s22 = smov (!%p278_p5, %s4930_s22), 1 }
  0x11   : > { %4257 = vmatprep.subr.mxu0 %v5022_v2  ;;  %v5028_v4 = vsub.f32 %v333_v0, %v5022_v2  ;;  %v5031_v5 = vsub.f32 %v332_v1, %v5024_v3  ;;  %s5034_s8 = scalar_select %p280_p6, %s4926_s21, 1 }
  0x12   : > { %4258 = vmatpush3.msra.mxu0 %v5022_v2  ;;  %s4858_s9 = smul.u32 72, %s6560_s22  ;;  %s3879_s10 = sshll.u32 %s6560_s22, 3 }
  0x13   : > { %v5038_v6 = vand.u32 4294901760, %v5028_v4  ;;  %4259 = vmatprep.subr.mxu0 %v5024_v3  ;;  %v5042_v7 = vand.u32 4294901760, %v5031_v5  ;;  %s4857_s11 = smul.u32 36, %s5034_s8  ;;  %s5048_s14 = scalar_lea.vmem %s6384_s6, %s3879_s10 }
  0x14   : > { %4260 = vmatpush3.msra.mxu0 %v5024_v3  ;;  %s4859_s20 = smul.u32 24, %s5034_s8 }
  0x15   : > { %v902_v8 = vsub.f32 %v5028_v4, %v5038_v6  ;;  %v909_v9 = vsub.f32 %v5031_v5, %v5042_v7  ;;  %s284_s15 = sadd.s32 %s4858_s9, %s4857_s11  ;;  %4373 = vmatprep.subr.mxu0 %v5028_v4 }
  0x16   : > { %s3877_s16 = sshll.u32 %s284_s15, 3  ;;  %s5873_s29 = scalar_lea.vmem %s6380_s2, %s4859_s20 }
  0x17   : > { %v903_v10 = vand.u32 4294901760, %v902_v8  ;;  %v910_v11 = vand.u32 4294901760, %v909_v9  ;;  %s5059_s19 = scalar_lea.vmem %s6378_s0, %s3877_s16 }
  0x18   : > { %v296_v12 = vld [vmem:[%s5059_s19] sm:$0xff]  ;;  %v297_v13 = vld [vmem:[%s5059_s19 + $0x8] sm:$0xff]  ;;  %v298_v14 = vld [vmem:[%s5059_s19 + $0x10] sm:$0xff] }
  0x19   : > { %4315 = vmatprep.subr.mxu1 %v903_v10  ;;  %v336_v15 = vsel %vm334_vm0, %v296_v12, 0  ;;  %v339_v16 = vsel %vm334_vm0, %v297_v13, 0  ;;  %v342_v17 = vsel %vm334_vm0, %v298_v14, 0  ;;  %v299_v18 = vld [vmem:[%s5059_s19 + $0x18] sm:$0xff]  ;;  %v300_v19 = vld [vmem:[%s5059_s19 + $0x20] sm:$0xff]  ;;  %v301_v20 = vld [vmem:[%s5059_s19 + $0x28] sm:$0xff] }
  0x1a   : > { %4316 = vmatpush3.msra.mxu1 %v903_v10  ;;  %v5070_v21 = vand.u32 4294901760, %v336_v15  ;;  %v5072_v22 = vand.u32 4294901760, %v339_v16  ;;  %v5074_v23 = vand.u32 4294901760, %v342_v17  ;;  %v345_v24 = vsel %vm334_vm0, %v299_v18, 0  ;;  %v302_v25 = vld [vmem:[%s5059_s19 + $0x30] sm:$0xff]  ;;  %v303_v26 = vld [vmem:[%s5059_s19 + $0x38] sm:$0xff] }
  0x1b   : > { %4317 = vmatprep.subr.mxu1 %v910_v11  ;;  %v5079_v27 = vand.u32 4294901760, %v345_v24  ;;  %v348_v28 = vsel %vm334_vm0, %v300_v19, 0  ;;  %v351_v29 = vsel %vm334_vm0, %v301_v20, 0  ;;  %v354_v30 = vsel %vm334_vm0, %v302_v25, 0  ;;  %v304_v55 = vld [vmem:[%s5059_s19 + $0x40] sm:$0xff]  ;;  %v305_v56 = vld [vmem:[%s5059_s19 + $0x48] sm:$0xff] }
  0x1c   : > { %v5085_v31 = vsub.f32 %v336_v15, %v5070_v21  ;;  %4318 = vmatpush3.msra.mxu1 %v910_v11  ;;  %4319 = vmatprep.mubr.f32.mxu1 %v5070_v21  ;;  %v5089_v32 = vsub.f32 %v339_v16, %v5072_v22  ;;  %v5092_v33 = vsub.f32 %v342_v17, %v5074_v23  ;;  %v5094_v34 = vand.u32 4294901760, %v348_v28  ;;  %v306_v57 = vld [vmem:[%s5059_s19 + $0x50] sm:$0xff]  ;;  %v307_v1 = vld [vmem:[%s5059_s19 + $0x58] sm:$0xff]  ;;  %v308_v8 = vld [vmem:[%s5059_s19 + $0x60] sm:$0xff] }
  0x1d   : > { %4320 = vmatmul.mubr.f32.vlgmr.msra.gmra.mxu1 %v5072_v22  ;;  %4431 = vmatprep.subr.mxu1 %v5022_v2  ;;  %v5099_v35 = vsub.f32 %v345_v24, %v5079_v27  ;;  %v5101_v36 = vand.u32 4294901760, %v351_v29  ;;  %v5103_v37 = vand.u32 4294901760, %v354_v30  ;;  %v357_v38 = vsel %vm334_vm0, %v303_v26, 0  ;;  %v309_v17 = vld [vmem:[%s5059_s19 + $0x68] sm:$0xff]  ;;  %v310_v18 = vld [vmem:[%s5059_s19 + $0x70] sm:$0xff] }
  0x1e   : > { %v6400_v39 = vand.u32 4294901760, %v5085_v31  ;;  %v6398_v40 = vand.u32 4294901760, %v5089_v32  ;;  %4432 = vmatpush3.msra.mxu1 %v5022_v2  ;;  %v6396_v41 = vand.u32 4294901760, %v5092_v33  ;;  %4322 = vmatprep.mubr.f32.mxu1 %v5074_v23  ;;  %v5112_v42 = vsub.f32 %v348_v28, %v5094_v34 }
  0x1f   : > { %6453 = vst [vmem:[#allocation3_spill] sm:$0xff] %v5101_v36  ;;  %6454 = vst [vmem:[#allocation4_spill] sm:$0xff] %v5103_v37  ;;  %v6395_v43 = vand.u32 4294901760, %v5099_v35  ;;  %v5116_v44 = vsub.f32 %v351_v29, %v5101_v36  ;;  %v5119_v45 = vsub.f32 %v354_v30, %v5103_v37  ;;  %v5121_v46 = vand.u32 4294901760, %v357_v38  ;;  %4433 = vmatprep.subr.mxu1 %v5024_v3  ;;  %v311_v30 = vld [vmem:[%s5059_s19 + $0x78] sm:$0xff] }
  0x20   : > { %v513_v47 = vsub.f32 %v5085_v31, %v6400_v39  ;;  %v523_v48 = vsub.f32 %v5089_v32, %v6398_v40  ;;  %v533_v49 = vsub.f32 %v5092_v33, %v6396_v41  ;;  %v6393_v50 = vand.u32 4294901760, %v5112_v42  ;;  %4434 = vmatpush3.msra.mxu1 %v5024_v3 }
  0x21   : > { %6455 = vst [vmem:[#allocation5_spill] sm:$0xff] %v5121_v46  ;;  %v543_v51 = vsub.f32 %v5099_v35, %v6395_v43  ;;  %4323 = vmatmul.mubr.f32.gmra.mxu1 %v5079_v27  ;;  %v6392_v52 = vand.u32 4294901760, %v5116_v44  ;;  %v6391_v53 = vand.u32 4294901760, %v5119_v45  ;;  %v5142_v54 = vsub.f32 %v357_v38, %v5121_v46  ;;  %4547 = vmatprep.subr.mxu1 %v5022_v2  ;;  %v319_v43 = vld [vmem:[%s5059_s19 + $0xb8] sm:$0xff] }
  0x22   : > { %v514_v58 = vand.u32 4294901760, %v513_v47  ;;  %v524_v59 = vand.u32 4294901760, %v523_v48  ;;  %v534_v60 = vand.u32 4294901760, %v533_v49  ;;  %v553_v61 = vsub.f32 %v5112_v42, %v6393_v50  ;;  %4325 = vmatprep.mubr.f32.mxu1 %v5094_v34 }
  0x23   : > { %v563_v62 = vsub.f32 %v5116_v44, %v6392_v52  ;;  %v573_v63 = vsub.f32 %v5119_v45, %v6391_v53  ;;  %v6390_v0 = vand.u32 4294901760, %v5142_v54  ;;  %v544_v9 = vand.u32 4294901760, %v543_v51 }
  0x24   : > { %4261 = vmatprep.mubr.f32.mxu0 %v514_v58  ;;  %v360_v10 = vsel %vm334_vm0, %v304_v55, 0  ;;  %v363_v11 = vsel %vm334_vm0, %v305_v56, 0  ;;  %v366_v12 = vsel %vm334_vm0, %v306_v57, 0  ;;  %v554_v13 = vand.u32 4294901760, %v553_v61 }
  0x25   : > { %4262 = vmatmul.mubr.f32.vlgmr.msra.gmra.mxu0 %v524_v59  ;;  %v564_v14 = vand.u32 4294901760, %v563_v62  ;;  %4326 = vmatmul.mubr.f32.gmra.mxu1 %v5101_v36  ;;  %v574_v15 = vand.u32 4294901760, %v573_v63  ;;  %v5165_v16 = vand.u32 4294901760, %v360_v10  ;;  %v5170_v19 = vand.u32 4294901760, %v363_v11  ;;  %v328_v36 = vld [vmem:[%s5059_s19 + $0x100] sm:$0xff] }
  0x26   : > { %4374 = vmatpush3.msra.mxu0 %v5028_v4  ;;  %4264 = vmatprep.mubr.f32.mxu0 %v534_v60  ;;  %v5172_v20 = vand.u32 4294901760, %v366_v12  ;;  %v369_v24 = vsel %vm334_vm0, %v307_v1, 0  ;;  %v372_v25 = vsel %vm334_vm0, %v308_v8, 0  ;;  %v583_v26 = vsub.f32 %v5142_v54, %v6390_v0 }
  0x27   : > { %6456 = vst [vmem:[#allocation6_spill] sm:$0xff] %v5165_v16  ;;  %6457 = vst [vmem:[#allocation7_spill] sm:$0xff] %v5170_v19  ;;  %4328 = vmatprep.mubr.f32.mxu1 %v5103_v37  ;;  %v5181_v28 = vsub.f32 %v360_v10, %v5165_v16  ;;  %v5183_v29 = vand.u32 4294901760, %v369_v24  ;;  %v5185_v4 = vand.u32 4294901760, %v372_v25  ;;  %4375 = vmatprep.subr.mxu0 %v5031_v5  ;;  %v375_v48 = vsel %vm334_vm0, %v309_v17, 0 }
  0x28   : > { %6458 = vst [vmem:[#allocation8_spill] sm:$0xff] %v5172_v20  ;;  %v5190_v38 = vsub.f32 %v363_v11, %v5170_v19  ;;  %v5193_v47 = vsub.f32 %v366_v12, %v5172_v20  ;;  %v378_v49 = vsel %vm334_vm0, %v310_v18, 0  ;;  %4376 = vmatpush3.msra.mxu0 %v5031_v5  ;;  %v5206_v57 = vand.u32 4294901760, %v375_v48 }
  0x29   : > { %6459 = vst [vmem:[#allocation9_spill] sm:$0xff] %v5183_v29  ;;  %6460 = vst [vmem:[#allocation10_spill] sm:$0xff] %v5185_v4  ;;  %4265 = vmatmul.mubr.f32.gmra.mxu0 %v544_v9  ;;  %4329 = vmatmul.mubr.f32.gmra.mxu1 %v5121_v46  ;;  %v6389_v51 = vand.u32 4294901760, %v5181_v28  ;;  %v5201_v55 = vsub.f32 %v369_v24, %v5183_v29  ;;  %v5204_v56 = vsub.f32 %v372_v25, %v5185_v4  ;;  %v312_v9 = vld [vmem:[%s5059_s19 + $0x80] sm:$0xff]  ;;  %v331_v46 = vld [vmem:[%s5059_s19 + $0x118] sm:$0xff] }
  0x2a   : > { %6461 = vst [vmem:[#allocation11_spill] sm:$0xff] %v5206_v57  ;;  %4267 = vmatprep.mubr.f32.mxu0 %v554_v13  ;;  %4331 = vmatprep.mubr.f32.mxu1 %v5165_v16  ;;  %v6387_v58 = vand.u32 4294901760, %v5190_v38  ;;  %v6385_v5 = vand.u32 4294901760, %v5193_v47  ;;  %v5211_v59 = vand.u32 4294901760, %v378_v49  ;;  %v381_v60 = vsel %vm334_vm0, %v311_v30, 0  ;;  %v313_v13 = vld [vmem:[%s5059_s19 + $0x88] sm:$0xff] }
  0x2b   : > { %v593_v61 = vsub.f32 %v5181_v28, %v6389_v51  ;;  %v6386_v62 = vand.u32 4294901760, %v5201_v55  ;;  %v6388_v63 = vand.u32 4294901760, %v5204_v56  ;;  %4489 = vmatprep.subr.mxu0 %v5038_v6  ;;  %v5221_v1 = vsub.f32 %v375_v48, %v5206_v57  ;;  %v315_v30 = vld [vmem:[%s5059_s19 + $0x98] sm:$0xff]  ;;  %v317_v51 = vld [vmem:[%s5059_s19 + $0xa8] sm:$0xff]  ;;  %v330_v16 = vld [vmem:[%s5059_s19 + $0x110] sm:$0xff] }
  0x2c   : > { %6462 = vst [vmem:[#allocation12_spill] sm:$0xff] %v5211_v59  ;;  %v5223_v8 = vand.u32 4294901760, %v381_v60  ;;  %v584_v10 = vand.u32 4294901760, %v583_v26  ;;  %v603_v11 = vsub.f32 %v5190_v38, %v6387_v58  ;;  %v613_v12 = vsub.f32 %v5193_v47, %v6385_v5  ;;  %v316_v5 = vld [vmem:[%s5059_s19 + $0xa0] sm:$0xff] }
  0x2d   : > { %4268 = vmatmul.mubr.f32.gmra.mxu0 %v564_v14  ;;  %4332 = vmatmul.mubr.f32.gmra.mxu1 %v5170_v19  ;;  %v594_v17 = vand.u32 4294901760, %v593_v61  ;;  %v5236_v18 = vsub.f32 %v378_v49, %v5211_v59  ;;  %v314_v14 = vld [vmem:[%s5059_s19 + $0x90] sm:$0xff]  ;;  %v623_v24 = vsub.f32 %v5201_v55, %v6386_v62  ;;  %v633_v25 = vsub.f32 %v5204_v56, %v6388_v63 }
  0x2e   : > { %6463 = vst [vmem:[#allocation13_spill] sm:$0xff] %v5223_v8  ;;  %4270 = vmatprep.mubr.f32.mxu0 %v574_v15  ;;  %4334 = vmatprep.mubr.f32.mxu1 %v5172_v20  ;;  %v384_v26 = vsel %vm334_vm0, %v312_v9, 0  ;;  %v6394_v15 = vand.u32 4294901760, %v5221_v1  ;;  %v5249_v48 = vsub.f32 %v381_v60, %v5223_v8  ;;  %v387_v61 = vsel %vm334_vm0, %v313_v13, 0  ;;  %v329_v20 = vld [vmem:[%s5059_s19 + $0x108] sm:$0xff] }
  0x2f   : > { %v5251_v49 = vand.u32 4294901760, %v384_v26  ;;  %v604_v62 = vand.u32 4294901760, %v603_v11  ;;  %v614_v58 = vand.u32 4294901760, %v613_v12  ;;  %v5256_v63 = vand.u32 4294901760, %v387_v61  ;;  %v318_v11 = vld [vmem:[%s5059_s19 + $0xb0] sm:$0xff] }
  0x30   : > { %v390_v9 = vsel %vm334_vm0, %v314_v14, 0  ;;  %v6397_v60 = vand.u32 4294901760, %v5236_v18  ;;  %v396_v12 = vsel %vm334_vm0, %v316_v5, 0  ;;  %v624_v53 = vand.u32 4294901760, %v623_v24 }
  0x31   : > { %6464 = vst [vmem:[#allocation14_spill] sm:$0xff] %v5251_v49  ;;  %4271 = vmatmul.mubr.f32.gmra.mxu0 %v584_v10  ;;  %4335 = vmatmul.mubr.f32.gmra.mxu1 %v5183_v29  ;;  %6465 = vst [vmem:[#allocation15_spill] sm:$0xff] %v5256_v63  ;;  %v5263_v0 = vsub.f32 %v384_v26, %v5251_v49  ;;  %v5265_v13 = vand.u32 4294901760, %v390_v9  ;;  %v393_v10 = vsel %vm334_vm0, %v315_v30, 0  ;;  %v6399_v14 = vand.u32 4294901760, %v5249_v48  ;;  %v325_v29 = vld [vmem:[%s5059_s19 + $0xe8] sm:$0xff] }
  0x32   : > { %4273 = vmatprep.mubr.f32.mxu0 %v594_v17  ;;  %4337 = vmatprep.mubr.f32.mxu1 %v5185_v4  ;;  %v643_v17 = vsub.f32 %v5221_v1, %v6394_v15  ;;  %v399_v52 = vsel %vm334_vm0, %v317_v51, 0  ;;  %v5278_v30 = vsub.f32 %v387_v61, %v5256_v63  ;;  %v5280_v5 = vand.u32 4294901760, %v393_v10 }
  0x33   : > { %6466 = vst [vmem:[#allocation16_spill] sm:$0xff] %v5265_v13  ;;  %v6405_v26 = vand.u32 4294901760, %v5263_v0  ;;  %v402_v24 = vsel %vm334_vm0, %v318_v11, 0  ;;  %v634_v50 = vand.u32 4294901760, %v633_v25  ;;  %v653_v15 = vsub.f32 %v5236_v18, %v6397_v60  ;;  %v320_v11 = vld [vmem:[%s5059_s19 + $0xc0] sm:$0xff]  ;;  %v322_v60 = vld [vmem:[%s5059_s19 + $0xd0] sm:$0xff] }
  0x34   : > { %6467 = vst [vmem:[#allocation17_spill] sm:$0xff] %v5280_v5  ;;  %v5288_v51 = vsub.f32 %v390_v9, %v5265_v13  ;;  %v5293_v61 = vand.u32 4294901760, %v399_v52  ;;  %v644_v41 = vand.u32 4294901760, %v643_v17  ;;  %v5298_v25 = vand.u32 4294901760, %v402_v24 }
  0x35   : > { %4274 = vmatmul.mubr.f32.gmra.mxu0 %v604_v62  ;;  %4338 = vmatmul.mubr.f32.gmra.mxu1 %v5206_v57  ;;  %v5290_v62 = vand.u32 4294901760, %v396_v12  ;;  %v673_v9 = vsub.f32 %v5263_v0, %v6405_v26  ;;  %v5307_v40 = vsub.f32 %v393_v10, %v5280_v5  ;;  %v405_v17 = vsel %vm334_vm0, %v319_v43, 0 }
  0x36   : > { %4276 = vmatprep.mubr.f32.mxu0 %v614_v58  ;;  %4340 = vmatprep.mubr.f32.mxu1 %v5211_v59  ;;  %6469 = vst [vmem:[#allocation19_spill] sm:$0xff] %v5293_v61  ;;  %v663_v58 = vsub.f32 %v5249_v48, %v6399_v14  ;;  %6470 = vst [vmem:[#allocation20_spill] sm:$0xff] %v5298_v25  ;;  %v654_v14 = vand.u32 4294901760, %v653_v15  ;;  %v5317_v59 = vsub.f32 %v399_v52, %v5293_v61 }
  0x37   : > { %6468 = vst [vmem:[#allocation18_spill] sm:$0xff] %v5290_v62  ;;  %v408_v26 = vsel %vm334_vm0, %v320_v11, 0  ;;  %v5322_v43 = vsub.f32 %v402_v24, %v5298_v25  ;;  %v674_v15 = vand.u32 4294901760, %v673_v9  ;;  %v6472_v39 = vand.u32 4294901760, %v5278_v30 }
  0x38   : > { %v664_v10 = vand.u32 4294901760, %v663_v58  ;;  %v6473_v58 = vand.u32 4294901760, %v5288_v51  ;;  %v5337_v9 = vand.u32 4294901760, %v408_v26  ;;  %v423_v19 = vsel %vm334_vm0, %v325_v29, 0 }
  0x39   : > { %4277 = vmatmul.mubr.f32.gmra.mxu0 %v624_v53  ;;  %4341 = vmatmul.mubr.f32.gmra.mxu1 %v5223_v8  ;;  %v5313_v53 = vsub.f32 %v396_v12, %v5290_v62  ;;  %v321_v8 = vld [vmem:[%s5059_s19 + $0xc8] sm:$0xff]  ;;  %v683_v12 = vsub.f32 %v5278_v30, %v6472_v39  ;;  %v323_v39 = vld [vmem:[%s5059_s19 + $0xd8] sm:$0xff] }
  0x3a   : > { %4279 = vmatprep.mubr.f32.mxu0 %v634_v50  ;;  %4343 = vmatprep.mubr.f32.mxu1 %v5251_v49  ;;  %v5324_v50 = vand.u32 4294901760, %v405_v17  ;;  %v411_v11 = vsel %vm334_vm0, %v321_v8, 0  ;;  %v693_v24 = vsub.f32 %v5288_v51, %v6473_v58  ;;  %6474 = vst [vmem:[#allocation22_spill] sm:$0xff] %v5337_v9  ;;  %v414_v49 = vsel %vm334_vm0, %v322_v60, 0  ;;  %v324_v58 = vld [vmem:[%s5059_s19 + $0xe0] sm:$0xff] }
  0x3b   : > { %v5353_v60 = vand.u32 4294901760, %v414_v49  ;;  %v417_v52 = vsel %vm334_vm0, %v323_v39, 0  ;;  %v6479_v39 = vand.u32 4294901760, %v5322_v43 }
  0x3c   : > { %6471 = vst [vmem:[#allocation21_spill] sm:$0xff] %v5324_v50  ;;  %v5344_v8 = vsub.f32 %v405_v17, %v5324_v50  ;;  %v694_v17 = vand.u32 4294901760, %v693_v24 }
  0x3d   : > { %4280 = vmatmul.mubr.f32.gmra.mxu0 %v644_v41  ;;  %4344 = vmatmul.mubr.f32.gmra.mxu1 %v5256_v63  ;;  %v6476_v41 = vand.u32 4294901760, %v5307_v40  ;;  %v6477_v63 = vand.u32 4294901760, %v5313_v53 }
  0x3e   : > { %4282 = vmatprep.mubr.f32.mxu0 %v654_v14  ;;  %4346 = vmatprep.mubr.f32.mxu1 %v5265_v13  ;;  %v5346_v14 = vand.u32 4294901760, %v411_v11  ;;  %v684_v13 = vand.u32 4294901760, %v683_v12  ;;  %v6478_v12 = vand.u32 4294901760, %v5317_v59 }
  0x3f   : > { %v703_v57 = vsub.f32 %v5307_v40, %v6476_v41  ;;  %v713_v4 = vsub.f32 %v5313_v53, %v6477_v63 }
  0x40   : > { %6475 = vst [vmem:[#allocation23_spill] sm:$0xff] %v5346_v14  ;;  %v723_v41 = vsub.f32 %v5317_v59, %v6478_v12  ;;  %v5373_v63 = vsub.f32 %v411_v11, %v5346_v14 }
  0x41   : > { %4283 = vmatmul.mubr.f32.gmra.mxu0 %v664_v10  ;;  %4347 = vmatmul.mubr.f32.gmra.mxu1 %v5280_v5  ;;  %v5361_v10 = vsub.f32 %v408_v26, %v5337_v9  ;;  %v420_v5 = vsel %vm334_vm0, %v324_v58, 0  ;;  %v5375_v26 = vand.u32 4294901760, %v417_v52  ;;  %v704_v12 = vand.u32 4294901760, %v703_v57 }
  0x42   : > { %4285 = vmatprep.mubr.f32.mxu0 %v674_v15  ;;  %4349 = vmatprep.mubr.f32.mxu1 %v5290_v62  ;;  %v733_v15 = vsub.f32 %v5322_v43, %v6479_v39  ;;  %v326_v62 = vld [vmem:[%s5059_s19 + $0xf0] sm:$0xff]  ;;  %v5381_v58 = vsub.f32 %v414_v49, %v5353_v60  ;;  %v714_v39 = vand.u32 4294901760, %v713_v4  ;;  %v5385_v24 = vand.u32 4294901760, %v420_v5 }
  0x43   : > { %6480 = vst [vmem:[#allocation24_spill] sm:$0xff] %v5375_v26  ;;  %v426_v57 = vsel %vm334_vm0, %v326_v62, 0  ;;  %v435_v49 = vsel %vm334_vm0, %v329_v20, 0  ;;  %v5398_v11 = vsub.f32 %v417_v52, %v5375_v26  ;;  %v5403_v62 = vand.u32 4294901760, %v423_v19 }
  0x44   : > { %6481 = vst [vmem:[#allocation25_spill] sm:$0xff] %v5385_v24  ;;  %v734_v37 = vand.u32 4294901760, %v733_v15  ;;  %v438_v20 = vsel %vm334_vm0, %v330_v16, 0  ;;  %v6484_v15 = vand.u32 4294901760, %v5361_v10  ;;  %v5412_v52 = vsub.f32 %v420_v5, %v5385_v24 }
  0x45   : > { %4286 = vmatmul.mubr.f32.gmra.mxu0 %v684_v13  ;;  %4350 = vmatmul.mubr.f32.gmra.mxu1 %v5293_v61  ;;  %v724_v13 = vand.u32 4294901760, %v723_v41  ;;  %v327_v61 = vld [vmem:[%s5059_s19 + $0xf8] sm:$0xff]  ;;  %6483 = vst [vmem:[#allocation26_spill] sm:$0xff] %v5403_v62  ;;  %v441_v41 = vsel %vm334_vm0, %v331_v46, 0  ;;  %v6485_v16 = vand.u32 4294901760, %v5373_v63 }
  0x46   : > { %4288 = vmatprep.mubr.f32.mxu0 %v694_v17  ;;  %4352 = vmatprep.mubr.f32.mxu1 %v5298_v25  ;;  %v6482_v17 = vand.u32 4294901760, %v5344_v8  ;;  %v429_v29 = vsel %vm334_vm0, %v327_v61, 0  ;;  %v432_v25 = vsel %vm334_vm0, %v328_v36, 0 }
  0x47   : > { %v763_v46 = vsub.f32 %v5373_v63, %v6485_v16  ;;  %v5429_v61 = vand.u32 4294901760, %v429_v29  ;;  %v5446_v16 = vand.u32 4294901760, %v435_v49 }
  0x48   : > { %v743_v4 = vsub.f32 %v5344_v8, %v6482_v17  ;;  %v753_v17 = vsub.f32 %v5361_v10, %v6484_v15  ;;  %v6486_v15 = vand.u32 4294901760, %v5381_v58 }
  0x49   : > { %4289 = vmatmul.mubr.f32.gmra.mxu0 %v704_v12  ;;  %4353 = vmatmul.mubr.f32.gmra.mxu1 %v5324_v50  ;;  %v5414_v12 = vand.u32 4294901760, %v426_v57 }
  0x4a   : > { %4291 = vmatprep.mubr.f32.mxu0 %v714_v39  ;;  %4355 = vmatprep.mubr.f32.mxu1 %v5337_v9  ;;  %v744_v50 = vand.u32 4294901760, %v743_v4  ;;  %v773_v5 = vsub.f32 %v5381_v58, %v6486_v15  ;;  %v5427_v9 = vsub.f32 %v423_v19, %v5403_v62  ;;  %v754_v36 = vand.u32 4294901760, %v753_v17 }
  0x4b   : > { %v5436_v4 = vand.u32 4294901760, %v432_v25  ;;  %v764_v39 = vand.u32 4294901760, %v763_v46  ;;  %v5444_v17 = vsub.f32 %v429_v29, %v5429_v61 }
  0x4c   : > { %v774_v19 = vand.u32 4294901760, %v773_v5  ;;  %v5456_v5 = vand.u32 4294901760, %v438_v20  ;;  %v6489_v29 = vand.u32 4294901760, %v5427_v9 }
  0x4d   : > { %4292 = vmatmul.mubr.f32.gmra.mxu0 %v724_v13  ;;  %4356 = vmatmul.mubr.f32.gmra.mxu1 %v5346_v14  ;;  %v5434_v13 = vsub.f32 %v426_v57, %v5414_v12  ;;  %v6487_v14 = vand.u32 4294901760, %v5398_v11  ;;  %v6488_v57 = vand.u32 4294901760, %v5412_v52 }
  0x4e   : > { %4294 = vmatprep.mubr.f32.mxu0 %v734_v37  ;;  %4358 = vmatprep.mubr.f32.mxu1 %v5353_v60 }
  0x4f   : > { %v783_v15 = vsub.f32 %v5398_v11, %v6487_v14  ;;  %v793_v46 = vsub.f32 %v5412_v52, %v6488_v57  ;;  %v6450_v14 = vand.u32 4294901760, %v5434_v13  ;;  %v5464_v57 = vsub.f32 %v435_v49, %v5446_v16 }
  0x50   : > { %v6490_v49 = vand.u32 4294901760, %v5444_v17 }
  0x51   : > { %4295 = vmatmul.mubr.f32.gmra.mxu0 %v744_v50  ;;  %4359 = vmatmul.mubr.f32.gmra.mxu1 %v5375_v26  ;;  %v5454_v50 = vsub.f32 %v432_v25, %v5436_v4  ;;  %v784_v37 = vand.u32 4294901760, %v783_v15  ;;  %v803_v26 = vsub.f32 %v5427_v9, %v6489_v29  ;;  %v794_v25 = vand.u32 4294901760, %v793_v46 }
  0x52   : > { %4297 = vmatprep.mubr.f32.mxu0 %v754_v36  ;;  %4361 = vmatprep.mubr.f32.mxu1 %v5385_v24  ;;  %v5466_v24 = vand.u32 4294901760, %v441_v41  ;;  %v813_v15 = vsub.f32 %v5434_v13, %v6450_v14  ;;  %v5474_v29 = vsub.f32 %v438_v20, %v5456_v5 }
  0x53   : > { %v804_v36 = vand.u32 4294901760, %v803_v26 }
  0x54   : > { %v5482_v46 = vsub.f32 %v441_v41, %v5466_v24  ;;  %v814_v14 = vand.u32 4294901760, %v813_v15  ;;  %v852_v26 = vand.u32 4294901760, %v5474_v29 }
  0x55   : > { %4298 = vmatmul.mubr.f32.gmra.mxu0 %v764_v39  ;;  %4362 = vmatmul.mubr.f32.gmra.mxu1 %v5403_v62  ;;  %v6451_v39 = vand.u32 4294901760, %v5454_v50  ;;  %v823_v62 = vsub.f32 %v5444_v17, %v6490_v49 }
  0x56   : > { %4300 = vmatprep.mubr.f32.mxu0 %v774_v19  ;;  %4364 = vmatprep.mubr.f32.mxu1 %v5414_v12  ;;  %v6452_v19 = vand.u32 4294901760, %v5464_v57  ;;  %v862_v41 = vand.u32 4294901760, %v5482_v46  ;;  %v853_v15 = vsub.f32 %v5474_v29, %v852_v26 }
  0x57   : > { %v833_v20 = vsub.f32 %v5454_v50, %v6451_v39 }
  0x58   : > { %v843_v49 = vsub.f32 %v5464_v57, %v6452_v19  ;;  %v6491_v19 = vand.u32 4294901760, %v5085_v31 }
  0x59   : > { %4301 = vmatmul.mubr.f32.gmra.mxu0 %v784_v37  ;;  %4365 = vmatmul.mubr.f32.gmra.mxu1 %v5429_v61  ;;  %v824_v37 = vand.u32 4294901760, %v823_v62  ;;  %v863_v62 = vsub.f32 %v5482_v46, %v862_v41 }
  0x5a   : > { %4303 = vmatprep.mubr.f32.mxu0 %v794_v25  ;;  %4367 = vmatprep.mubr.f32.mxu1 %v5436_v4  ;;  %v834_v25 = vand.u32 4294901760, %v833_v20  ;;  %v844_v39 = vand.u32 4294901760, %v843_v49  ;;  %v6492_v20 = vand.u32 4294901760, %v5089_v32  ;;  %v6494_v49 = vand.u32 4294901760, %v5099_v35 }
  0x5d   : > { %4304 = vmatmul.mubr.f32.gmra.mxu0 %v804_v36  ;;  %4368 = vmatmul.mubr.f32.gmra.mxu1 %v5446_v16  ;;  %v854_v36 = vand.u32 4294901760, %v853_v15 }
  0x5e   : > { %4306 = vmatprep.mubr.f32.mxu0 %v814_v14  ;;  %4370 = vmatprep.mubr.f32.mxu1 %v5456_v5  ;;  %v864_v14 = vand.u32 4294901760, %v863_v62  ;;  %v6545_v62 = vld [vmem:[#allocation23_spill] sm:$0xff] }
  0x61   : > { %4307 = vmatmul.mubr.f32.gmra.mxu0 %v824_v37  ;;  %4371 = vmatmul.mubr.f32.gmra.mxu1 %v5466_v24  ;;  %v6493_v37 = vand.u32 4294901760, %v5092_v33 }
  0x62   : > { %4309 = vmatprep.mubr.f32.mxu0 %v834_v25  ;;  %4435 = vmatprep.mubr.f32.mxu1 %v6491_v19  ;;  %v6540_v19 = vld [vmem:[#allocation18_spill] sm:$0xff] }
  0x63   : > { %v6544_v25 = vld [vmem:[#allocation22_spill] sm:$0xff] }
  0x65   : > { %4310 = vmatmul.mubr.f32.gmra.mxu0 %v844_v39  ;;  %4436 = vmatmul.mubr.f32.vlgmr.msra.gmra.mxu1 %v6492_v20  ;;  %v6495_v39 = vand.u32 4294901760, %v5112_v42  ;;  %v6546_v20 = vld [vmem:[#allocation24_spill] sm:$0xff] }
  0x66   : > { %4312 = vmatprep.mubr.f32.mxu0 %v854_v36  ;;  %4548 = vmatpush3.msra.mxu1 %v5022_v2  ;;  %v6496_v2 = vand.u32 4294901760, %v5116_v44 }
  0x67   : > { %4438 = vmatprep.mubr.f32.mxu1 %v6493_v37  ;;  %4549 = vmatprep.subr.mxu1 %v5024_v3  ;;  %v6547_v37 = vld [vmem:[#allocation25_spill] sm:$0xff] }
  0x68   : > { %4550 = vmatpush3.msra.mxu1 %v5024_v3  ;;  %v6497_v3 = vand.u32 4294901760, %v5119_v45 }
  0x69   : > { %4313 = vmatmul.mubr.f32.gmra.mxu0 %v864_v14  ;;  %4439 = vmatmul.mubr.f32.gmra.mxu1 %v6494_v49 }
  0x6a   : > { %4377 = vmatprep.mubr.f32.mxu0 %v5085_v31  ;;  %4441 = vmatprep.mubr.f32.mxu1 %v6495_v39  ;;  %v6498_v31 = vand.u32 4294901760, %v5142_v54 }
  0x6d   : > { %4378 = vmatmul.mubr.f32.vlgmr.msra.gmra.mxu0 %v5089_v32  ;;  %4442 = vmatmul.mubr.f32.gmra.mxu1 %v6496_v2  ;;  %v6499_v32 = vand.u32 4294901760, %v5181_v28 }
  0x6e   : > { %4490 = vmatpush3.msra.mxu0 %v5038_v6  ;;  %4380 = vmatprep.mubr.f32.mxu0 %v5092_v33  ;;  %v6500_v6 = vand.u32 4294901760, %v5190_v38  ;;  %v6501_v33 = vand.u32 4294901760, %v5193_v47 }
  0x6f   : > { %4444 = vmatprep.mubr.f32.mxu1 %v6497_v3  ;;  %4491 = vmatprep.subr.mxu0 %v5042_v7  ;;  %v6548_v3 = vld [vmem:[#allocation26_spill] sm:$0xff] }
  0x70   : > { %4492 = vmatpush3.msra.mxu0 %v5042_v7  ;;  %v6502_v7 = vand.u32 4294901760, %v5201_v55 }
  0x71   : > { %4381 = vmatmul.mubr.f32.gmra.mxu0 %v5099_v35  ;;  %4445 = vmatmul.mubr.f32.gmra.mxu1 %v6498_v31  ;;  %v6503_v35 = vand.u32 4294901760, %v5204_v56 }
  0x72   : > { %4383 = vmatprep.mubr.f32.mxu0 %v5112_v42  ;;  %4447 = vmatprep.mubr.f32.mxu1 %v6499_v32  ;;  %v6504_v42 = vand.u32 4294901760, %v5221_v1 }
  0x75   : > { %4384 = vmatmul.mubr.f32.gmra.mxu0 %v5116_v44  ;;  %4448 = vmatmul.mubr.f32.gmra.mxu1 %v6500_v6  ;;  %v6505_v44 = vand.u32 4294901760, %v5236_v18 }
  0x76   : > { %4386 = vmatprep.mubr.f32.mxu0 %v5119_v45  ;;  %4450 = vmatprep.mubr.f32.mxu1 %v6501_v33  ;;  %v6506_v45 = vand.u32 4294901760, %v5249_v48 }
  0x79   : > { %4387 = vmatmul.mubr.f32.gmra.mxu0 %v5142_v54  ;;  %4451 = vmatmul.mubr.f32.gmra.mxu1 %v6502_v7  ;;  %v6507_v54 = vand.u32 4294901760, %v5263_v0 }
  0x7a   : > { %4389 = vmatprep.mubr.f32.mxu0 %v5181_v28  ;;  %4453 = vmatprep.mubr.f32.mxu1 %v6503_v35  ;;  %v6508_v28 = vand.u32 4294901760, %v5278_v30 }
  0x7d   : > { %4390 = vmatmul.mubr.f32.gmra.mxu0 %v5190_v38  ;;  %4454 = vmatmul.mubr.f32.gmra.mxu1 %v6504_v42  ;;  %v6509_v38 = vand.u32 4294901760, %v5288_v51 }
  0x7e   : > { %4392 = vmatprep.mubr.f32.mxu0 %v5193_v47  ;;  %4456 = vmatprep.mubr.f32.mxu1 %v6505_v44  ;;  %v6510_v47 = vand.u32 4294901760, %v5307_v40 }
  0x81   : > { %4393 = vmatmul.mubr.f32.gmra.mxu0 %v5201_v55  ;;  %4457 = vmatmul.mubr.f32.gmra.mxu1 %v6506_v45  ;;  %v6511_v55 = vand.u32 4294901760, %v5313_v53 }
  0x82   : > { %4395 = vmatprep.mubr.f32.mxu0 %v5204_v56  ;;  %4459 = vmatprep.mubr.f32.mxu1 %v6507_v54  ;;  %v6512_v56 = vand.u32 4294901760, %v5317_v59 }
  0x85   : > { %4396 = vmatmul.mubr.f32.gmra.mxu0 %v5221_v1  ;;  %4460 = vmatmul.mubr.f32.gmra.mxu1 %v6508_v28  ;;  %v6513_v1 = vand.u32 4294901760, %v5322_v43 }
  0x86   : > { %4398 = vmatprep.mubr.f32.mxu0 %v5236_v18  ;;  %4462 = vmatprep.mubr.f32.mxu1 %v6509_v38  ;;  %v6514_v18 = vand.u32 4294901760, %v5344_v8 }
  0x89   : > { %4399 = vmatmul.mubr.f32.gmra.mxu0 %v5249_v48  ;;  %4463 = vmatmul.mubr.f32.gmra.mxu1 %v6510_v47  ;;  %v6516_v48 = vand.u32 4294901760, %v5373_v63 }
  0x8a   : > { %4401 = vmatprep.mubr.f32.mxu0 %v5263_v0  ;;  %4465 = vmatprep.mubr.f32.mxu1 %v6511_v55  ;;  %v6515_v0 = vand.u32 4294901760, %v5361_v10 }
  0x8d   : > { %4402 = vmatmul.mubr.f32.gmra.mxu0 %v5278_v30  ;;  %4466 = vmatmul.mubr.f32.gmra.mxu1 %v6512_v56  ;;  %v6517_v30 = vand.u32 4294901760, %v5381_v58 }
  0x8e   : > { %4404 = vmatprep.mubr.f32.mxu0 %v5288_v51  ;;  %4468 = vmatprep.mubr.f32.mxu1 %v6513_v1  ;;  %v6519_v51 = vand.u32 4294901760, %v5412_v52 }
  0x91   : > { %4405 = vmatmul.mubr.f32.gmra.mxu0 %v5307_v40  ;;  %4469 = vmatmul.mubr.f32.gmra.mxu1 %v6514_v18  ;;  %v6518_v40 = vand.u32 4294901760, %v5398_v11 }
  0x92   : > { %4407 = vmatprep.mubr.f32.mxu0 %v5313_v53  ;;  %4471 = vmatprep.mubr.f32.mxu1 %v6515_v0  ;;  %v6521_v53 = vand.u32 4294901760, %v5434_v13 }
  0x95   : > { %4408 = vmatmul.mubr.f32.gmra.mxu0 %v5317_v59  ;;  %4472 = vmatmul.mubr.f32.gmra.mxu1 %v6516_v48  ;;  %v6520_v59 = vand.u32 4294901760, %v5427_v9 }
  0x96   : > { %4410 = vmatprep.mubr.f32.mxu0 %v5322_v43  ;;  %4474 = vmatprep.mubr.f32.mxu1 %v6517_v30  ;;  %v6522_v43 = vand.u32 4294901760, %v5444_v17 }
  0x99   : > { %4411 = vmatmul.mubr.f32.gmra.mxu0 %v5344_v8  ;;  %4475 = vmatmul.mubr.f32.gmra.mxu1 %v6518_v40  ;;  %v6523_v8 = vand.u32 4294901760, %v5454_v50 }
  0x9a   : > { %4413 = vmatprep.mubr.f32.mxu0 %v5361_v10  ;;  %4477 = vmatprep.mubr.f32.mxu1 %v6519_v51  ;;  %v6524_v10 = vand.u32 4294901760, %v5464_v57 }
  0x9d   : > { %4414 = vmatmul.mubr.f32.gmra.mxu0 %v5373_v63  ;;  %4478 = vmatmul.mubr.f32.gmra.mxu1 %v6520_v59  ;;  %v6526_v63 = vld [vmem:[#allocation4_spill] sm:$0xff] }
  0x9e   : > { %4416 = vmatprep.mubr.f32.mxu0 %v5381_v58  ;;  %4480 = vmatprep.mubr.f32.mxu1 %v6521_v53  ;;  %v6527_v58 = vld [vmem:[#allocation5_spill] sm:$0xff] }
  0xa1   : > { %4417 = vmatmul.mubr.f32.gmra.mxu0 %v5398_v11  ;;  %4481 = vmatmul.mubr.f32.gmra.mxu1 %v6522_v43  ;;  %v6528_v11 = vld [vmem:[#allocation6_spill] sm:$0xff] }
  0xa2   : > { %4419 = vmatprep.mubr.f32.mxu0 %v5412_v52  ;;  %4483 = vmatprep.mubr.f32.mxu1 %v6523_v8  ;;  %v6534_v52 = vld [vmem:[#allocation12_spill] sm:$0xff] }
  0xa5   : > { %4420 = vmatmul.mubr.f32.gmra.mxu0 %v5427_v9  ;;  %4484 = vmatmul.mubr.f32.gmra.mxu1 %v6524_v10  ;;  %v6525_v9 = vld [vmem:[#allocation3_spill] sm:$0xff] }
  0xa6   : > { %4422 = vmatprep.mubr.f32.mxu0 %v5434_v13  ;;  %4486 = vmatprep.mubr.f32.mxu1 %v852_v26  ;;  %v6535_v13 = vld [vmem:[#allocation13_spill] sm:$0xff]  ;;  %v6542_v26 = vld [vmem:[#allocation20_spill] sm:$0xff] }
  0xa9   : > { %4423 = vmatmul.mubr.f32.gmra.mxu0 %v5444_v17  ;;  %4487 = vmatmul.mubr.f32.gmra.mxu1 %v862_v41  ;;  %v6536_v17 = vld [vmem:[#allocation14_spill] sm:$0xff]  ;;  %v6543_v41 = vld [vmem:[#allocation21_spill] sm:$0xff] }
  0xaa   : > { %4425 = vmatprep.mubr.f32.mxu0 %v5454_v50  ;;  %4551 = vmatprep.mubr.f32.mxu1 %v5070_v21  ;;  %v6537_v50 = vld [vmem:[#allocation15_spill] sm:$0xff] }
  0xad   : > { %4426 = vmatmul.mubr.f32.gmra.mxu0 %v5464_v57  ;;  %4552 = vmatmul.mubr.f32.vlgmr.msra.gmra.mxu1 %v5072_v22  ;;  %v6538_v57 = vld [vmem:[#allocation16_spill] sm:$0xff] }
  0xae   : > { %4428 = vmatprep.mubr.f32.mxu0 %v5474_v29  ;;  %4554 = vmatprep.mubr.f32.mxu1 %v5074_v23  ;;  %v6539_v29 = vld [vmem:[#allocation17_spill] sm:$0xff] }
  0xb1   : > { %4429 = vmatmul.mubr.f32.gmra.mxu0 %v5482_v46  ;;  %4555 = vmatmul.mubr.f32.gmra.mxu1 %v5079_v27  ;;  %v6541_v46 = vld [vmem:[#allocation19_spill] sm:$0xff] }
  0xb2   : > { %4493 = vmatprep.mubr.f32.mxu0 %v5070_v21  ;;  %4557 = vmatprep.mubr.f32.mxu1 %v5094_v34  ;;  %v6529_v21 = vld [vmem:[#allocation7_spill] sm:$0xff] }
  0xb5   : > { %4494 = vmatmul.mubr.f32.vlgmr.msra.gmra.mxu0 %v5072_v22  ;;  %4558 = vmatmul.mubr.f32.gmra.mxu1 %v6525_v9  ;;  %v6530_v22 = vld [vmem:[#allocation8_spill] sm:$0xff] }
  0xb6   : > { %4496 = vmatprep.mubr.f32.mxu0 %v5074_v23  ;;  %4560 = vmatprep.mubr.f32.mxu1 %v6526_v63  ;;  %v6531_v23 = vld [vmem:[#allocation9_spill] sm:$0xff] }
  0xb9   : > { %4497 = vmatmul.mubr.f32.gmra.mxu0 %v5079_v27  ;;  %4561 = vmatmul.mubr.f32.gmra.mxu1 %v6527_v58  ;;  %v6532_v27 = vld [vmem:[#allocation10_spill] sm:$0xff] }
  0xba   : > { %4499 = vmatprep.mubr.f32.mxu0 %v5094_v34  ;;  %4563 = vmatprep.mubr.f32.mxu1 %v6528_v11  ;;  %v6533_v34 = vld [vmem:[#allocation11_spill] sm:$0xff] }
  0xbd   : > { %4500 = vmatmul.mubr.f32.gmra.mxu0 %v6525_v9  ;;  %4564 = vmatmul.mubr.f32.gmra.mxu1 %v6529_v21 }
  0xbe   : > { %4502 = vmatprep.mubr.f32.mxu0 %v6526_v63  ;;  %4566 = vmatprep.mubr.f32.mxu1 %v6530_v22 }
  0xc1   : > { %4503 = vmatmul.mubr.f32.gmra.mxu0 %v6527_v58  ;;  %4567 = vmatmul.mubr.f32.gmra.mxu1 %v6531_v23 }
  0xc2   : > { %4505 = vmatprep.mubr.f32.mxu0 %v6528_v11  ;;  %4569 = vmatprep.mubr.f32.mxu1 %v6532_v27 }
  0xc5   : > { %4506 = vmatmul.mubr.f32.gmra.mxu0 %v6529_v21  ;;  %4570 = vmatmul.mubr.f32.gmra.mxu1 %v6533_v34 }
  0xc6   : > { %4508 = vmatprep.mubr.f32.mxu0 %v6530_v22  ;;  %4572 = vmatprep.mubr.f32.mxu1 %v6534_v52 }
  0xc9   : > { %4509 = vmatmul.mubr.f32.gmra.mxu0 %v6531_v23  ;;  %4573 = vmatmul.mubr.f32.gmra.mxu1 %v6535_v13 }
  0xca   : > { %4511 = vmatprep.mubr.f32.mxu0 %v6532_v27  ;;  %4575 = vmatprep.mubr.f32.mxu1 %v6536_v17 }
  0xcd   : > { %4512 = vmatmul.mubr.f32.gmra.mxu0 %v6533_v34  ;;  %4576 = vmatmul.mubr.f32.gmra.mxu1 %v6537_v50 }
  0xce   : > { %4514 = vmatprep.mubr.f32.mxu0 %v6534_v52  ;;  %4578 = vmatprep.mubr.f32.mxu1 %v6538_v57 }
  0xd1   : > { %4515 = vmatmul.mubr.f32.gmra.mxu0 %v6535_v13  ;;  %4579 = vmatmul.mubr.f32.gmra.mxu1 %v6539_v29 }
  0xd2   : > { %4517 = vmatprep.mubr.f32.mxu0 %v6536_v17  ;;  %4581 = vmatprep.mubr.f32.mxu1 %v6540_v19 }
  0xd5   : > { %4518 = vmatmul.mubr.f32.gmra.mxu0 %v6537_v50  ;;  %4582 = vmatmul.mubr.f32.gmra.mxu1 %v6541_v46 }
  0xd6   : > { %4520 = vmatprep.mubr.f32.mxu0 %v6538_v57  ;;  %4584 = vmatprep.mubr.f32.mxu1 %v6542_v26 }
  0xd9   : > { %4521 = vmatmul.mubr.f32.gmra.mxu0 %v6539_v29  ;;  %4585 = vmatmul.mubr.f32.gmra.mxu1 %v6543_v41 }
  0xda   : > { %4523 = vmatprep.mubr.f32.mxu0 %v6540_v19  ;;  %4587 = vmatprep.mubr.f32.mxu1 %v6544_v25 }
  0xdd   : > { %4524 = vmatmul.mubr.f32.gmra.mxu0 %v6541_v46  ;;  %v4321_v15 = vpop.f32.mrf.mxu1  ;;  %4588 = vmatmul.mubr.f32.gmra.mxu1 %v6545_v62 }
  0xde   : > { %4526 = vmatprep.mubr.f32.mxu0 %v6542_v26  ;;  %4590 = vmatprep.mubr.f32.mxu1 %v5353_v60 }
  0xdf   : > { %v947_v36 = vpop.f32.mrf.mxu1 }
  0xe1   : > { %4527 = vmatmul.mubr.f32.gmra.mxu0 %v6543_v41  ;;  %v4324_v14 = vpop.f32.mrf.mxu1  ;;  %4591 = vmatmul.mubr.f32.gmra.mxu1 %v6546_v20 }
  0xe2   : > { %4529 = vmatprep.mubr.f32.mxu0 %v6544_v25  ;;  %4593 = vmatprep.mubr.f32.mxu1 %v6547_v37 }
  0xe3   : > { %v959_v49 = vpop.f32.mrf.mxu1 }
  0xe5   : > { %v4263_v39 = vpop.f32.mrf.mxu0  ;;  %4530 = vmatmul.mubr.f32.gmra.mxu0 %v6545_v62  ;;  %v4327_v2 = vpop.f32.mrf.mxu1  ;;  %4594 = vmatmul.mubr.f32.gmra.mxu1 %v6548_v3 }
  0xe6   : > { %v5672_v31 = vadd.f32 %v4321_v15, %v4263_v39  ;;  %4532 = vmatprep.mubr.f32.mxu0 %v5353_v60  ;;  %4596 = vmatprep.mubr.f32.mxu1 %v5414_v12 }
  0xe7   : > { %v516_v32 = vpop.f32.mrf.mxu0  ;;  %v971_v6 = vpop.f32.mrf.mxu1 }
  0xe8   : > { %v5676_v33 = vadd.f32 %v947_v36, %v516_v32 }
  0xe9   : > { %v4266_v7 = vpop.f32.mrf.mxu0  ;;  %4533 = vmatmul.mubr.f32.gmra.mxu0 %v6546_v20  ;;  %v4330_v35 = vpop.f32.mrf.mxu1  ;;  %4597 = vmatmul.mubr.f32.gmra.mxu1 %v5429_v61 }
  0xea   : > { %v5680_v42 = vadd.f32 %v4324_v14, %v4266_v7  ;;  %4535 = vmatprep.mubr.f32.mxu0 %v6547_v37  ;;  %4599 = vmatprep.mubr.f32.mxu1 %v5436_v4 }
  0xeb   : > { %v536_v44 = vpop.f32.mrf.mxu0  ;;  %v983_v60 = vpop.f32.mrf.mxu1 }
  0xec   : > { %v5684_v45 = vadd.f32 %v959_v49, %v536_v44 }
  0xed   : > { %v4269_v54 = vpop.f32.mrf.mxu0  ;;  %4536 = vmatmul.mubr.f32.gmra.mxu0 %v6548_v3  ;;  %v4333_v28 = vpop.f32.mrf.mxu1  ;;  %4600 = vmatmul.mubr.f32.gmra.mxu1 %v5446_v16 }
  0xee   : > { %v5688_v38 = vadd.f32 %v4327_v2, %v4269_v54  ;;  %4538 = vmatprep.mubr.f32.mxu0 %v5414_v12  ;;  %4602 = vmatprep.mubr.f32.mxu1 %v5456_v5 }
  0xef   : > { %v556_v47 = vpop.f32.mrf.mxu0  ;;  %v995_v55 = vpop.f32.mrf.mxu1 }
  0xf0   : > { %v5692_v56 = vadd.f32 %v971_v6, %v556_v47 }
  0xf1   : > { %v4272_v1 = vpop.f32.mrf.mxu0  ;;  %4539 = vmatmul.mubr.f32.gmra.mxu0 %v5429_v61  ;;  %v4336_v18 = vpop.f32.mrf.mxu1  ;;  %4603 = vmatmul.mubr.f32.gmra.mxu1 %v5466_v24 }
  0xf2   : > { %v5696_v0 = vadd.f32 %v4330_v35, %v4272_v1  ;;  %4541 = vmatprep.mubr.f32.mxu0 %v5436_v4 }
  0xf3   : > { %v576_v48 = vpop.f32.mrf.mxu0  ;;  %v1007_v30 = vpop.f32.mrf.mxu1 }
  0xf4   : > { %v5699_v40 = vadd.f32 %v983_v60, %v576_v48 }
  0xf5   : > { %v4275_v12 = vpop.f32.mrf.mxu0  ;;  %4542 = vmatmul.mubr.f32.gmra.mxu0 %v5446_v16  ;;  %v4339_v51 = vpop.f32.mrf.mxu1 }
  0xf6   : > { %v5702_v59 = vadd.f32 %v4333_v28, %v4275_v12  ;;  %4544 = vmatprep.mubr.f32.mxu0 %v5456_v5 }
  0xf7   : > { %v596_v61 = vpop.f32.mrf.mxu0  ;;  %v1019_v53 = vpop.f32.mrf.mxu1 }
  0xf8   : > { %v5705_v43 = vadd.f32 %v995_v55, %v596_v61 }
  0xf9   : > { %v4278_v8 = vpop.f32.mrf.mxu0  ;;  %4545 = vmatmul.mubr.f32.gmra.mxu0 %v5466_v24  ;;  %v4342_v4 = vpop.f32.mrf.mxu1 }
  0xfa   : > { %v5708_v10 = vadd.f32 %v4336_v18, %v4278_v8 }
  0xfb   : > { %v616_v9 = vpop.f32.mrf.mxu0  ;;  %v1031_v63 = vpop.f32.mrf.mxu1 }
  0xfc   : > { %v5710_v58 = vadd.f32 %v1007_v30, %v616_v9 }
  0xfd   : > { %v4281_v16 = vpop.f32.mrf.mxu0  ;;  %v4345_v11 = vpop.f32.mrf.mxu1 }
  0xfe   : > { %v5712_v21 = vadd.f32 %v4339_v51, %v4281_v16 }
  0xff   : > { %v636_v22 = vpop.f32.mrf.mxu0  ;;  %v1043_v5 = vpop.f32.mrf.mxu1 }
 0x100   : > { %v5714_v23 = vadd.f32 %v1019_v53, %v636_v22 }
 0x101   : > { %v4284_v27 = vpop.f32.mrf.mxu0  ;;  %v4348_v34 = vpop.f32.mrf.mxu1 }
 0x102   : > { %v5716_v52 = vadd.f32 %v4342_v4, %v4284_v27 }
 0x103   : > { %v656_v24 = vpop.f32.mrf.mxu0  ;;  %v1055_v13 = vpop.f32.mrf.mxu1 }
 0x104   : > { %v5718_v17 = vadd.f32 %v1031_v63, %v656_v24 }
 0x105   : > { %v4287_v50 = vpop.f32.mrf.mxu0  ;;  %v4351_v57 = vpop.f32.mrf.mxu1 }
 0x106   : > { %v5720_v29 = vadd.f32 %v4345_v11, %v4287_v50 }
 0x107   : > { %v676_v19 = vpop.f32.mrf.mxu0  ;;  %v1067_v46 = vpop.f32.mrf.mxu1 }
 0x108   : > { %v5722_v26 = vadd.f32 %v1043_v5, %v676_v19 }
 0x109   : > { %v4290_v41 = vpop.f32.mrf.mxu0  ;;  %v4354_v25 = vpop.f32.mrf.mxu1 }
 0x10a   : > { %v5724_v15 = vadd.f32 %v4348_v34, %v4290_v41 }
 0x10b   : > { %v696_v62 = vpop.f32.mrf.mxu0  ;;  %v1079_v36 = vpop.f32.mrf.mxu1 }
 0x10c   : > { %v5726_v14 = vadd.f32 %v1055_v13, %v696_v62 }
 0x10d   : > { %v4293_v20 = vpop.f32.mrf.mxu0  ;;  %v4357_v37 = vpop.f32.mrf.mxu1 }
 0x10e   : > { %v5728_v49 = vadd.f32 %v4351_v57, %v4293_v20 }
 0x10f   : > { %v716_v39 = vpop.f32.mrf.mxu0  ;;  %v1091_v2 = vpop.f32.mrf.mxu1 }
 0x110   : > { %v5730_v3 = vadd.f32 %v1067_v46, %v716_v39 }
 0x111   : > { %v4296_v32 = vpop.f32.mrf.mxu0  ;;  %v4360_v6 = vpop.f32.mrf.mxu1 }
 0x112   : > { %v5732_v7 = vadd.f32 %v4354_v25, %v4296_v32 }
 0x113   : > { %v736_v35 = vpop.f32.mrf.mxu0  ;;  %v1103_v44 = vpop.f32.mrf.mxu1 }
 0x114   : > { %v5734_v60 = vadd.f32 %v1079_v36, %v736_v35 }
 0x115   : > { %v4299_v54 = vpop.f32.mrf.mxu0  ;;  %v4363_v28 = vpop.f32.mrf.mxu1 }
 0x116   : > { %v5736_v47 = vadd.f32 %v4357_v37, %v4299_v54 }
 0x117   : > { %v756_v55 = vpop.f32.mrf.mxu0  ;;  %v1115_v1 = vpop.f32.mrf.mxu1 }
 0x118   : > { %v5738_v18 = vadd.f32 %v1091_v2, %v756_v55 }
 0x119   : > { %v4302_v48 = vpop.f32.mrf.mxu0  ;;  %v4366_v30 = vpop.f32.mrf.mxu1 }
 0x11a   : > { %v5740_v12 = vadd.f32 %v4360_v6, %v4302_v48 }
 0x11b   : > { %v776_v51 = vpop.f32.mrf.mxu0  ;;  %v1127_v61 = vpop.f32.mrf.mxu1 }
 0x11c   : > { %v5742_v53 = vadd.f32 %v1103_v44, %v776_v51 }
 0x11d   : > { %v4305_v8 = vpop.f32.mrf.mxu0  ;;  %v4369_v4 = vpop.f32.mrf.mxu1 }
 0x11e   : > { %v5744_v9 = vadd.f32 %v4363_v28, %v4305_v8 }
 0x11f   : > { %v796_v63 = vpop.f32.mrf.mxu0  ;;  %v1139_v16 = vpop.f32.mrf.mxu1 }
 0x120   : > { %v5746_v11 = vadd.f32 %v1115_v1, %v796_v63 }
 0x121   : > { %v4308_v22 = vpop.f32.mrf.mxu0  ;;  %v4372_v5 = vpop.f32.mrf.mxu1 }
 0x122   : > { %v5748_v27 = vadd.f32 %v4366_v30, %v4308_v22 }
 0x123   : > { %v816_v34 = vpop.f32.mrf.mxu0  ;;  %v1151_v24 = vpop.f32.mrf.mxu1 }
 0x124   : > { %v5750_v13 = vadd.f32 %v1127_v61, %v816_v34 }
 0x125   : > { %v4311_v50 = vpop.f32.mrf.mxu0  ;;  %v4437_v57 = vpop.f32.mrf.mxu1 }
 0x126   : > { %v5752_v19 = vadd.f32 %v4369_v4, %v4311_v50 }
 0x127   : > { %v836_v46 = vpop.f32.mrf.mxu0  ;;  %v1553_v41 = vpop.f32.mrf.mxu1 }
 0x128   : > { %v5754_v25 = vadd.f32 %v1139_v16, %v836_v46 }
 0x129   : > { %v4314_v62 = vpop.f32.mrf.mxu0  ;;  %v4440_v36 = vpop.f32.mrf.mxu1 }
 0x12a   : > { %v5756_v20 = vadd.f32 %v4372_v5, %v4314_v62 }
 0x12b   : > { %v856_v37 = vpop.f32.mrf.mxu0  ;;  %v1569_v39 = vpop.f32.mrf.mxu1 }
 0x12c   : > { %v5758_v2 = vadd.f32 %v1151_v24, %v856_v37 }
 0x12d   : > { %v4379_v32 = vpop.f32.mrf.mxu0  ;;  %v4443_v6 = vpop.f32.mrf.mxu1 }
 0x12e   : > { %v1241_v35 = vadd.f32 %v4379_v32, %v5672_v31 }
 0x12f   : > { %v1233_v44 = vpop.f32.mrf.mxu0  ;;  %v1585_v54 = vpop.f32.mrf.mxu1 }
 0x130   : > { %v5761_v28 = vadd.f32 %v4437_v57, %v1241_v35  ;;  %v1234_v55 = vadd.f32 %v1233_v44, %v5676_v33 }
 0x131   : > { %v4382_v1 = vpop.f32.mrf.mxu0  ;;  %v4446_v48 = vpop.f32.mrf.mxu1 }
 0x132   : > { %v5764_v30 = vadd.f32 %v1553_v41, %v1234_v55  ;;  %v1255_v51 = vadd.f32 %v4382_v1, %v5680_v42 }
 0x133   : > { %v1247_v61 = vpop.f32.mrf.mxu0  ;;  %v1601_v8 = vpop.f32.mrf.mxu1 }
 0x134   : > { %v5767_v4 = vadd.f32 %v4440_v36, %v1255_v51  ;;  %v1248_v63 = vadd.f32 %v1247_v61, %v5684_v45 }
 0x135   : > { %v4385_v16 = vpop.f32.mrf.mxu0  ;;  %v4449_v31 = vpop.f32.mrf.mxu1 }
 0x136   : > { %v5770_v22 = vadd.f32 %v1569_v39, %v1248_v63  ;;  %v1269_v5 = vadd.f32 %v4385_v16, %v5688_v38 }
 0x137   : > { %v1261_v34 = vpop.f32.mrf.mxu0  ;;  %v1617_v33 = vpop.f32.mrf.mxu1 }
 0x138   : > { %v5773_v24 = vadd.f32 %v4443_v6, %v1269_v5  ;;  %v1262_v50 = vadd.f32 %v1261_v34, %v5692_v56 }
 0x139   : > { %v4388_v57 = vpop.f32.mrf.mxu0  ;;  %v4452_v42 = vpop.f32.mrf.mxu1 }
 0x13a   : > { %v5776_v46 = vadd.f32 %v1585_v54, %v1262_v50  ;;  %v1283_v41 = vadd.f32 %v4388_v57, %v5696_v0 }
 0x13b   : > { %v1275_v62 = vpop.f32.mrf.mxu0  ;;  %v1633_v45 = vpop.f32.mrf.mxu1 }
 0x13c   : > { %v5779_v36 = vadd.f32 %v4446_v48, %v1283_v41  ;;  %v1276_v37 = vadd.f32 %v1275_v62, %v5699_v40 }
 0x13d   : > { %v4391_v39 = vpop.f32.mrf.mxu0  ;;  %v4455_v38 = vpop.f32.mrf.mxu1 }
 0x13e   : > { %v5782_v32 = vadd.f32 %v1601_v8, %v1276_v37  ;;  %v1297_v6 = vadd.f32 %v4391_v39, %v5702_v59 }
 0x13f   : > { %v1289_v35 = vpop.f32.mrf.mxu0  ;;  %v1649_v56 = vpop.f32.mrf.mxu1 }
 0x140   : > { %v5785_v44 = vadd.f32 %v4449_v31, %v1297_v6  ;;  %v1290_v54 = vadd.f32 %v1289_v35, %v5705_v43 }
 0x141   : > { %v4394_v55 = vpop.f32.mrf.mxu0  ;;  %v4458_v0 = vpop.f32.mrf.mxu1 }
 0x142   : > { %v5788_v1 = vadd.f32 %v1617_v33, %v1290_v54  ;;  %v1311_v48 = vadd.f32 %v4394_v55, %v5708_v10 }
 0x143   : > { %v1303_v51 = vpop.f32.mrf.mxu0  ;;  %v1665_v40 = vpop.f32.mrf.mxu1 }
 0x144   : > { %v5791_v61 = vadd.f32 %v4452_v42, %v1311_v48  ;;  %v1304_v8 = vadd.f32 %v1303_v51, %v5710_v58 }
 0x145   : > { %v4397_v63 = vpop.f32.mrf.mxu0  ;;  %v4461_v59 = vpop.f32.mrf.mxu1 }
 0x146   : > { %v5794_v16 = vadd.f32 %v1633_v45, %v1304_v8  ;;  %v1325_v31 = vadd.f32 %v4397_v63, %v5712_v21 }
 0x147   : > { %v1317_v5 = vpop.f32.mrf.mxu0  ;;  %v1681_v43 = vpop.f32.mrf.mxu1 }
 0x148   : > { %v5797_v34 = vadd.f32 %v4455_v38, %v1325_v31  ;;  %v1318_v33 = vadd.f32 %v1317_v5, %v5714_v23 }
 0x149   : > { %v4400_v50 = vpop.f32.mrf.mxu0  ;;  %v4464_v10 = vpop.f32.mrf.mxu1 }
 0x14a   : > { %v5800_v57 = vadd.f32 %v1649_v56, %v1318_v33  ;;  %v1339_v42 = vadd.f32 %v4400_v50, %v5716_v52 }
 0x14b   : > { %v1331_v41 = vpop.f32.mrf.mxu0  ;;  %v1697_v58 = vpop.f32.mrf.mxu1 }
 0x14c   : > { %v5803_v62 = vadd.f32 %v4458_v0, %v1339_v42  ;;  %v1332_v45 = vadd.f32 %v1331_v41, %v5718_v17 }
 0x14d   : > { %v4403_v37 = vpop.f32.mrf.mxu0  ;;  %v4467_v21 = vpop.f32.mrf.mxu1 }
 0x14e   : > { %v5806_v39 = vadd.f32 %v1665_v40, %v1332_v45  ;;  %v1353_v38 = vadd.f32 %v4403_v37, %v5720_v29 }
 0x14f   : > { %v1345_v6 = vpop.f32.mrf.mxu0  ;;  %v1713_v23 = vpop.f32.mrf.mxu1 }
 0x150   : > { %v5809_v35 = vadd.f32 %v4461_v59, %v1353_v38  ;;  %v1346_v56 = vadd.f32 %v1345_v6, %v5722_v26 }
 0x151   : > { %v4406_v54 = vpop.f32.mrf.mxu0  ;;  %v4470_v52 = vpop.f32.mrf.mxu1 }
 0x152   : > { %v5812_v55 = vadd.f32 %v1681_v43, %v1346_v56  ;;  %v1367_v0 = vadd.f32 %v4406_v54, %v5724_v15 }
 0x153   : > { %v1359_v48 = vpop.f32.mrf.mxu0  ;;  %v1729_v17 = vpop.f32.mrf.mxu1 }
 0x154   : > { %v5815_v51 = vadd.f32 %v4464_v10, %v1367_v0  ;;  %v1360_v40 = vadd.f32 %v1359_v48, %v5726_v14 }
 0x155   : > { %v4409_v8 = vpop.f32.mrf.mxu0  ;;  %v4473_v29 = vpop.f32.mrf.mxu1 }
 0x156   : > { %v5818_v63 = vadd.f32 %v1697_v58, %v1360_v40  ;;  %v1381_v59 = vadd.f32 %v4409_v8, %v5728_v49 }
 0x157   : > { %v1373_v31 = vpop.f32.mrf.mxu0  ;;  %v1745_v26 = vpop.f32.mrf.mxu1 }
 0x158   : > { %v5821_v5 = vadd.f32 %v4467_v21, %v1381_v59  ;;  %v1374_v43 = vadd.f32 %v1373_v31, %v5730_v3 }
 0x159   : > { %v4412_v33 = vpop.f32.mrf.mxu0  ;;  %v4476_v15 = vpop.f32.mrf.mxu1 }
 0x15a   : > { %v5824_v50 = vadd.f32 %v1713_v23, %v1374_v43  ;;  %v1395_v10 = vadd.f32 %v4412_v33, %v5732_v7 }
 0x15b   : > { %v1387_v42 = vpop.f32.mrf.mxu0  ;;  %v1761_v14 = vpop.f32.mrf.mxu1 }
 0x15c   : > { %v5827_v41 = vadd.f32 %v4470_v52, %v1395_v10  ;;  %v1388_v58 = vadd.f32 %v1387_v42, %v5734_v60 }
 0x15d   : > { %v4415_v45 = vpop.f32.mrf.mxu0  ;;  %v4479_v49 = vpop.f32.mrf.mxu1 }
 0x15e   : > { %v5830_v37 = vadd.f32 %v1729_v17, %v1388_v58  ;;  %v1409_v21 = vadd.f32 %v4415_v45, %v5736_v47 }
 0x15f   : > { %v1401_v38 = vpop.f32.mrf.mxu0  ;;  %v1777_v3 = vpop.f32.mrf.mxu1 }
 0x160   : > { %v5833_v6 = vadd.f32 %v4473_v29, %v1409_v21  ;;  %v1402_v23 = vadd.f32 %v1401_v38, %v5738_v18 }
 0x161   : > { %v4418_v56 = vpop.f32.mrf.mxu0  ;;  %v4482_v7 = vpop.f32.mrf.mxu1 }
 0x162   : > { %v5836_v54 = vadd.f32 %v1745_v26, %v1402_v23  ;;  %v1423_v52 = vadd.f32 %v4418_v56, %v5740_v12 }
 0x163   : > { %v1415_v0 = vpop.f32.mrf.mxu0  ;;  %v1793_v60 = vpop.f32.mrf.mxu1 }
 0x164   : > { %v5839_v48 = vadd.f32 %v4476_v15, %v1423_v52  ;;  %v1416_v17 = vadd.f32 %v1415_v0, %v5742_v53 }
 0x165   : > { %v4421_v40 = vpop.f32.mrf.mxu0  ;;  %v4485_v47 = vpop.f32.mrf.mxu1 }
 0x166   : > { %v5842_v8 = vadd.f32 %v1761_v14, %v1416_v17  ;;  %v1437_v29 = vadd.f32 %v4421_v40, %v5744_v9 }
 0x167   : > { %v1429_v59 = vpop.f32.mrf.mxu0  ;;  %v1809_v18 = vpop.f32.mrf.mxu1 }
 0x168   : > { %v5845_v31 = vadd.f32 %v4479_v49, %v1437_v29  ;;  %v1430_v26 = vadd.f32 %v1429_v59, %v5746_v11 }
 0x169   : > { %v4424_v43 = vpop.f32.mrf.mxu0  ;;  %v4488_v12 = vpop.f32.mrf.mxu1 }
 0x16a   : > { %v5848_v33 = vadd.f32 %v1777_v3, %v1430_v26  ;;  %v1451_v15 = vadd.f32 %v4424_v43, %v5748_v27  ;;  %v3880_v43 = vld [vmem:[%s5873_s29] ss:$0 sm:$0xff] }
 0x16b   : > { %v1443_v10 = vpop.f32.mrf.mxu0  ;;  %v1825_v53 = vpop.f32.mrf.mxu1 }
 0x16c   : > { %v5851_v42 = vadd.f32 %v4482_v7, %v1451_v15  ;;  %v1444_v14 = vadd.f32 %v1443_v10, %v5750_v13 }
 0x16d   : > { %v4427_v58 = vpop.f32.mrf.mxu0  ;;  %v4553_v9 = vpop.f32.mrf.mxu1 }
 0x16e   : > { %v5854_v45 = vadd.f32 %v1793_v60, %v1444_v14  ;;  %v1465_v49 = vadd.f32 %v4427_v58, %v5752_v19 }
 0x16f   : > { %v1457_v11 = vpop.f32.mrf.mxu0  ;;  %v2193_v21 = vpop.f32.mrf.mxu1 }
 0x170   : > { %v5857_v38 = vadd.f32 %v4485_v47, %v1465_v49  ;;  %v1458_v3 = vadd.f32 %v1457_v11, %v5754_v25 }
 0x171   : > { %v4430_v27 = vpop.f32.mrf.mxu0  ;;  %v4556_v23 = vpop.f32.mrf.mxu1 }
 0x172   : > { %v5860_v56 = vadd.f32 %v1809_v18, %v1458_v3  ;;  %v1479_v7 = vadd.f32 %v4430_v27, %v5756_v20 }
 0x173   : > { %v1471_v13 = vpop.f32.mrf.mxu0  ;;  %v2205_v52 = vpop.f32.mrf.mxu1 }
 0x174   : > { %v5863_v0 = vadd.f32 %v4488_v12, %v1479_v7  ;;  %v1472_v60 = vadd.f32 %v1471_v13, %v5758_v2  ;;  %v3882_v7 = vld [vmem:[%s5873_s29 + $0x2] ss:$0 sm:$0xff] }
 0x175   : > { %v4495_v19 = vpop.f32.mrf.mxu0  ;;  %v4559_v17 = vpop.f32.mrf.mxu1 }
 0x176   : > { %v5867_v40 = vadd.f32 %v1825_v53, %v1472_v60  ;;  %v1917_v47 = vadd.f32 %v4495_v19, %v5761_v28  ;;  %v3881_v28 = vld [vmem:[%s5873_s29 + $0x1] ss:$0 sm:$0xff] }
 0x177   : > { %v1910_v25 = vpop.f32.mrf.mxu0  ;;  %v2217_v29 = vpop.f32.mrf.mxu1 }
 0x178   : > { %v1911_v20 = vadd.f32 %v1910_v25, %v5764_v30  ;;  %v2200_v18 = vadd.f32 %v4553_v9, %v1917_v47 }
 0x179   : > { %v4498_v59 = vpop.f32.mrf.mxu0  ;;  %v4562_v2 = vpop.f32.mrf.mxu1 }
 0x17a   : > { %v1929_v26 = vadd.f32 %v4498_v59, %v5767_v4  ;;  %v2194_v12 = vadd.f32 %v2193_v21, %v1911_v20  ;;  %v2413_v11 = vmul.f32 %v3880_v43, %v2200_v18  ;;  %v3883_v18 = vld [vmem:[%s5873_s29 + $0x3] ss:$0 sm:$0xff] }
 0x17b   : > { %v1922_v15 = vpop.f32.mrf.mxu0  ;;  %v2229_v10 = vpop.f32.mrf.mxu1 }
 0x17c   : > { %v2212_v53 = vadd.f32 %v4556_v23, %v1929_v26  ;;  %v1923_v14 = vadd.f32 %v1922_v15, %v5770_v22  ;;  %v2412_v9 = vmul.f32 %v3880_v43, %v2194_v12 }
 0x17d   : > { %v4501_v58 = vpop.f32.mrf.mxu0  ;;  %v4565_v49 = vpop.f32.mrf.mxu1 }
 0x17e   : > { %v2420_v3 = vmul.f32 %v3881_v28, %v2212_v53  ;;  %v2206_v27 = vadd.f32 %v2205_v52, %v1923_v14  ;;  %v1941_v30 = vadd.f32 %v4501_v58, %v5773_v24 }
 0x17f   : > { %v1934_v13 = vpop.f32.mrf.mxu0  ;;  %v2241_v4 = vpop.f32.mrf.mxu1 }
 0x180   : > { %v2422_v60 = vadd.f32 %v2420_v3, %v2413_v11  ;;  %v2419_v21 = vmul.f32 %v3881_v28, %v2206_v27  ;;  %v2224_v19 = vadd.f32 %v4559_v17, %v1941_v30  ;;  %v1935_v47 = vadd.f32 %v1934_v13, %v5776_v46  ;;  %v3884_v3 = vld [vmem:[%s5873_s29 + $0x4] ss:$0 sm:$0xff] }
 0x181   : > { %v4504_v23 = vpop.f32.mrf.mxu0  ;;  %v4568_v25 = vpop.f32.mrf.mxu1 }
 0x182   : > { %v2421_v22 = vadd.f32 %v2419_v21, %v2412_v9  ;;  %v2429_v20 = vmul.f32 %v3882_v7, %v2224_v19  ;;  %v2218_v59 = vadd.f32 %v2217_v29, %v1935_v47  ;;  %v1953_v52 = vadd.f32 %v4504_v23, %v5779_v36  ;;  %v3885_v47 = vld [vmem:[%s5873_s29 + $0x5] ss:$0 sm:$0xff] }
 0x183   : > { %v1946_v26 = vpop.f32.mrf.mxu0  ;;  %v2253_v24 = vpop.f32.mrf.mxu1 }
 0x184   : > { %v2431_v43 = vadd.f32 %v2429_v20, %v2422_v60  ;;  %v2428_v12 = vmul.f32 %v3882_v7, %v2218_v59  ;;  %v2236_v15 = vadd.f32 %v4562_v2, %v1953_v52  ;;  %v1947_v53 = vadd.f32 %v1946_v26, %v5782_v32 }
 0x185   : > { %v4507_v28 = vpop.f32.mrf.mxu0  ;;  %v4571_v17 = vpop.f32.mrf.mxu1 }
 0x186   : > { %v2430_v14 = vadd.f32 %v2428_v12, %v2421_v22  ;;  %v2438_v46 = vmul.f32 %v3883_v18, %v2236_v15  ;;  %v2230_v58 = vadd.f32 %v2229_v10, %v1947_v53  ;;  %v1965_v11 = vadd.f32 %v4507_v28, %v5785_v44  ;;  %v3886_v12 = vld [vmem:[%s5873_s29 + $0x6] ss:$0 sm:$0xff] }
 0x187   : > { %v1958_v29 = vpop.f32.mrf.mxu0  ;;  %v2265_v27 = vpop.f32.mrf.mxu1 }
 0x188   : > { %v2440_v36 = vadd.f32 %v2438_v46, %v2431_v43  ;;  %v2437_v30 = vmul.f32 %v3883_v18, %v2230_v58  ;;  %v2248_v9 = vadd.f32 %v4565_v49, %v1965_v11  ;;  %v1959_v13 = vadd.f32 %v1958_v29, %v5788_v1  ;;  %v3887_v29 = vld [vmem:[%s5873_s29 + $0x7] ss:$0 sm:$0xff] }
 0x189   : > { %v4510_v7 = vpop.f32.mrf.mxu0  ;;  %v4574_v2 = vpop.f32.mrf.mxu1 }
 0x18a   : > { %v2439_v60 = vadd.f32 %v2437_v30, %v2430_v14  ;;  %v2447_v32 = vmul.f32 %v3884_v3, %v2248_v9  ;;  %v2242_v21 = vadd.f32 %v2241_v4, %v1959_v13  ;;  %v1977_v19 = vadd.f32 %v4510_v7, %v5791_v61 }
 0x18b   : > { %v1970_v10 = vpop.f32.mrf.mxu0  ;;  %v2277_v23 = vpop.f32.mrf.mxu1 }
 0x18c   : > { %v2449_v44 = vadd.f32 %v2447_v32, %v2440_v36  ;;  %v2446_v22 = vmul.f32 %v3884_v3, %v2242_v21  ;;  %v2260_v20 = vadd.f32 %v4568_v25, %v1977_v19  ;;  %v1971_v59 = vadd.f32 %v1970_v10, %v5794_v16  ;;  %v3888_v19 = vld [vmem:[%s5873_s29 + $0x8] ss:$0 sm:$0xff] }
 0x18d   : > { %v4513_v52 = vpop.f32.mrf.mxu0  ;;  %v4577_v49 = vpop.f32.mrf.mxu1 }
 0x18e   : > { %v2448_v18 = vadd.f32 %v2446_v22, %v2439_v60  ;;  %v2456_v1 = vmul.f32 %v3885_v47, %v2260_v20  ;;  %v2254_v26 = vadd.f32 %v2253_v24, %v1971_v59  ;;  %v1989_v43 = vadd.f32 %v4513_v52, %v5797_v34 }
 0x18f   : > { %v1982_v4 = vpop.f32.mrf.mxu0  ;;  %v2289_v15 = vpop.f32.mrf.mxu1 }
 0x190   : > { %v2458_v61 = vadd.f32 %v2456_v1, %v2449_v44  ;;  %v2455_v53 = vmul.f32 %v3885_v47, %v2254_v26  ;;  %v2272_v28 = vadd.f32 %v4571_v17, %v1989_v43  ;;  %v1983_v14 = vadd.f32 %v1982_v4, %v5800_v57  ;;  %v3889_v1 = vld [vmem:[%s5873_s29 + $0x9] ss:$0 sm:$0xff] }
 0x191   : > { %v4516_v46 = vpop.f32.mrf.mxu0  ;;  %v4580_v25 = vpop.f32.mrf.mxu1 }
 0x192   : > { %v2457_v58 = vadd.f32 %v2455_v53, %v2448_v18  ;;  %v2465_v16 = vmul.f32 %v3886_v12, %v2272_v28  ;;  %v2266_v11 = vadd.f32 %v2265_v27, %v1983_v14  ;;  %v2001_v3 = vadd.f32 %v4516_v46, %v5803_v62  ;;  %v3890_v46 = vld [vmem:[%s5873_s29 + $0xa] ss:$0 sm:$0xff] }
 0x193   : > { %v1994_v24 = vpop.f32.mrf.mxu0  ;;  %v2301_v36 = vpop.f32.mrf.mxu1 }
 0x194   : > { %v2467_v34 = vadd.f32 %v2465_v16, %v2458_v61  ;;  %v2464_v30 = vmul.f32 %v3886_v12, %v2266_v11  ;;  %v2284_v9 = vadd.f32 %v4574_v2, %v2001_v3  ;;  %v1995_v13 = vadd.f32 %v1994_v24, %v5806_v39 }
 0x195   : > { %v4519_v7 = vpop.f32.mrf.mxu0  ;;  %v4583_v17 = vpop.f32.mrf.mxu1 }
 0x196   : > { %v2466_v60 = vadd.f32 %v2464_v30, %v2457_v58  ;;  %v2474_v57 = vmul.f32 %v3887_v29, %v2284_v9  ;;  %v2278_v32 = vadd.f32 %v2277_v23, %v1995_v13  ;;  %v2013_v21 = vadd.f32 %v4519_v7, %v5809_v35  ;;  %v3891_v9 = vld [vmem:[%s5873_s29 + $0xb] ss:$0 sm:$0xff] }
 0x197   : > { %v2006_v27 = vpop.f32.mrf.mxu0  ;;  %v2313_v47 = vpop.f32.mrf.mxu1 }
 0x198   : > { %v2476_v62 = vadd.f32 %v2474_v57, %v2467_v34  ;;  %v2473_v10 = vmul.f32 %v3887_v29, %v2278_v32  ;;  %v2296_v44 = vadd.f32 %v4577_v49, %v2013_v21  ;;  %v2007_v22 = vadd.f32 %v2006_v27, %v5812_v55 }
 0x199   : > { %v4522_v20 = vpop.f32.mrf.mxu0  ;;  %v4586_v2 = vpop.f32.mrf.mxu1 }
 0x19a   : > { %v2475_v59 = vadd.f32 %v2473_v10, %v2466_v60  ;;  %v2483_v39 = vmul.f32 %v3888_v19, %v2296_v44  ;;  %v2290_v52 = vadd.f32 %v2289_v15, %v2007_v22  ;;  %v2025_v18 = vadd.f32 %v4522_v20, %v5815_v51 }
 0x19b   : > { %v2018_v23 = vpop.f32.mrf.mxu0  ;;  %v2325_v26 = vpop.f32.mrf.mxu1 }
 0x19c   : > { %v2485_v35 = vadd.f32 %v2483_v39, %v2476_v62  ;;  %v2482_v43 = vmul.f32 %v3888_v19, %v2290_v52  ;;  %v2308_v12 = vadd.f32 %v4580_v25, %v2025_v18  ;;  %v2019_v4 = vadd.f32 %v2018_v23, %v5818_v63  ;;  %v3892_v62 = vld [vmem:[%s5873_s29 + $0xc] ss:$0 sm:$0xff] }
 0x19d   : > { %v4525_v61 = vpop.f32.mrf.mxu0  ;;  %v4589_v49 = vpop.f32.mrf.mxu1 }
 0x19e   : > { %v2484_v53 = vadd.f32 %v2482_v43, %v2475_v59  ;;  %v2492_v55 = vmul.f32 %v3889_v1, %v2308_v12  ;;  %v2302_v28 = vadd.f32 %v2301_v36, %v2019_v4  ;;  %v2037_v14 = vadd.f32 %v4525_v61, %v5821_v5 }
 0x19f   : > { %v2030_v15 = vpop.f32.mrf.mxu0  ;;  %v2337_v58 = vpop.f32.mrf.mxu1 }
 0x1a0   : > { %v2494_v51 = vadd.f32 %v2492_v55, %v2485_v35  ;;  %v2491_v16 = vmul.f32 %v3889_v1, %v2302_v28  ;;  %v2320_v11 = vadd.f32 %v4583_v17, %v2037_v14  ;;  %v2031_v3 = vadd.f32 %v2030_v15, %v5824_v50  ;;  %v3893_v1 = vld [vmem:[%s5873_s29 + $0xd] ss:$0 sm:$0xff]  ;;  %v3894_v55 = vld [vmem:[%s5873_s29 + $0xe] ss:$0 sm:$0xff] }
 0x1a1   : > { %v4528_v29 = vpop.f32.mrf.mxu0  ;;  %v4592_v25 = vpop.f32.mrf.mxu1 }
 0x1a2   : > { %v2493_v24 = vadd.f32 %v2491_v16, %v2484_v53  ;;  %v2501_v63 = vmul.f32 %v3890_v46, %v2320_v11  ;;  %v2314_v34 = vadd.f32 %v2313_v47, %v2031_v3  ;;  %v2049_v30 = vadd.f32 %v4528_v29, %v5827_v41  ;;  %v3895_v29 = vld [vmem:[%s5873_s29 + $0xf] ss:$0 sm:$0xff] }
 0x1a3   : > { %v2042_v36 = vpop.f32.mrf.mxu0  ;;  %v2349_v13 = vpop.f32.mrf.mxu1 }
 0x1a4   : > { %v2503_v5 = vadd.f32 %v2501_v63, %v2494_v51  ;;  %v2500_v7 = vmul.f32 %v3890_v46, %v2314_v34  ;;  %v2332_v60 = vadd.f32 %v4586_v2, %v2049_v30  ;;  %v2043_v57 = vadd.f32 %v2042_v36, %v5830_v37 }
 0x1a5   : > { %v4531_v32 = vpop.f32.mrf.mxu0  ;;  %v4595_v17 = vpop.f32.mrf.mxu1 }
 0x1a6   : > { %v2502_v21 = vadd.f32 %v2500_v7, %v2493_v24  ;;  %v2510_v50 = vmul.f32 %v3891_v9, %v2332_v60  ;;  %v2326_v19 = vadd.f32 %v2325_v26, %v2043_v57  ;;  %v2061_v27 = vadd.f32 %v4531_v32, %v5833_v6  ;;  %v3896_v7 = vld [vmem:[%s5873_s29 + $0x10] ss:$0 sm:$0xff] }
 0x1a7   : > { %v2054_v47 = vpop.f32.mrf.mxu0  ;;  %v2361_v10 = vpop.f32.mrf.mxu1 }
 0x1a8   : > { %v2512_v41 = vadd.f32 %v2510_v50, %v2503_v5  ;;  %v2509_v44 = vmul.f32 %v3891_v9, %v2326_v19  ;;  %v2344_v22 = vadd.f32 %v4589_v49, %v2061_v27  ;;  %v2055_v20 = vadd.f32 %v2054_v47, %v5836_v54  ;;  %v3897_v47 = vld [vmem:[%s5873_s29 + $0x11] ss:$0 sm:$0xff] }
 0x1a9   : > { %v4534_v59 = vpop.f32.mrf.mxu0  ;;  %v4598_v2 = vpop.f32.mrf.mxu1 }
 0x1aa   : > { %v2511_v39 = vadd.f32 %v2509_v44, %v2502_v21  ;;  %v2519_v37 = vmul.f32 %v3892_v62, %v2344_v22  ;;  %v2338_v52 = vadd.f32 %v2337_v58, %v2055_v20  ;;  %v2073_v18 = vadd.f32 %v4534_v59, %v5839_v48 }
 0x1ab   : > { %v2066_v23 = vpop.f32.mrf.mxu0  ;;  %v2373_v4 = vpop.f32.mrf.mxu1 }
 0x1ac   : > { %v2521_v26 = vadd.f32 %v2519_v37, %v2512_v41  ;;  %v2518_v6 = vmul.f32 %v3892_v62, %v2338_v52  ;;  %v2356_v35 = vadd.f32 %v4592_v25, %v2073_v18  ;;  %v2067_v43 = vadd.f32 %v2066_v23, %v5842_v8 }
 0x1ad   : > { %v4537_v12 = vpop.f32.mrf.mxu0  ;;  %v4601_v51 = vpop.f32.mrf.mxu1 }
 0x1ae   : > { %v2520_v61 = vadd.f32 %v2518_v6, %v2511_v39  ;;  %v2528_v54 = vmul.f32 %v3893_v1, %v2356_v35  ;;  %v2350_v49 = vadd.f32 %v2349_v13, %v2067_v43  ;;  %v2085_v53 = vadd.f32 %v4537_v12, %v5845_v31 }
 0x1af   : > { %v2078_v28 = vpop.f32.mrf.mxu0  ;;  %v2385_v9 = vpop.f32.mrf.mxu1 }
 0x1b0   : > { %v2530_v14 = vadd.f32 %v2528_v54, %v2521_v26  ;;  %v2527_v46 = vmul.f32 %v3893_v1, %v2350_v49  ;;  %v2368_v48 = vadd.f32 %v4595_v17, %v2085_v53  ;;  %v2079_v15 = vadd.f32 %v2078_v28, %v5848_v33 }
 0x1b1   : > { %v4540_v58 = vpop.f32.mrf.mxu0  ;;  %v4604_v50 = vpop.f32.mrf.mxu1 }
 0x1b2   : > { %v2529_v16 = vadd.f32 %v2527_v46, %v2520_v61  ;;  %v2537_v8 = vmul.f32 %v3894_v55, %v2368_v48  ;;  %v2362_v11 = vadd.f32 %v2361_v10, %v2079_v15  ;;  %v2097_v3 = vadd.f32 %v4540_v58, %v5851_v42 }
 0x1b3   : > { %v2090_v25 = vpop.f32.mrf.mxu0  ;;  %v2397_v20 = vpop.f32.mrf.mxu1 }
 0x1b4   : > { %v2539_v24 = vadd.f32 %v2537_v8, %v2530_v14  ;;  %v2536_v63 = vmul.f32 %v3894_v55, %v2362_v11  ;;  %v2380_v31 = vadd.f32 %v4598_v2, %v2097_v3  ;;  %v2091_v34 = vadd.f32 %v2090_v25, %v5854_v45 }
 0x1b5   : > { %v4543_v30 = vpop.f32.mrf.mxu0 }
 0x1b6   : > { %v2538_v36 = vadd.f32 %v2536_v63, %v2529_v16  ;;  %v2546_v33 = vmul.f32 %v3895_v29, %v2380_v31  ;;  %v2374_v13 = vadd.f32 %v2373_v4, %v2091_v34  ;;  %v2109_v5 = vadd.f32 %v4543_v30, %v5857_v38 }
 0x1b7   : > { %v2102_v60 = vpop.f32.mrf.mxu0 }
 0x1b8   : > { %v2548_v57 = vadd.f32 %v2546_v33, %v2539_v24  ;;  %v2545_v32 = vmul.f32 %v3895_v29, %v2374_v13  ;;  %v2392_v42 = vadd.f32 %v4601_v51, %v2109_v5  ;;  %v2103_v17 = vadd.f32 %v2102_v60, %v5860_v56 }
 0x1b9   : > { %v4546_v21 = vpop.f32.mrf.mxu0 }
 0x1ba   : > { %v2547_v19 = vadd.f32 %v2545_v32, %v2538_v36  ;;  %v2555_v27 = vmul.f32 %v3896_v7, %v2392_v42  ;;  %v2386_v45 = vadd.f32 %v2385_v9, %v2103_v17  ;;  %v2121_v62 = vadd.f32 %v4546_v21, %v5863_v0 }
 0x1bb   : > { %v2114_v10 = vpop.f32.mrf.mxu0 }
 0x1bc   : > { %v2557_v41 = vadd.f32 %v2555_v27, %v2548_v57  ;;  %v2554_v44 = vmul.f32 %v3896_v7, %v2386_v45  ;;  %v2404_v22 = vadd.f32 %v4604_v50, %v2121_v62  ;;  %v2115_v38 = vadd.f32 %v2114_v10, %v5867_v40 }
 0x1be   : > { %v2556_v59 = vadd.f32 %v2554_v44, %v2547_v19  ;;  %v2564_v2 = vmul.f32 %v3897_v47, %v2404_v22  ;;  %v2398_v39 = vadd.f32 %v2397_v20, %v2115_v38  ;;  %2570 = sbr.rel (%p3898_p7) target bundleno = 453 (0x1c5), region = 48 }
 0x1c0   : > { %v2566_v37 = vadd.f32 %v2564_v2, %v2557_v41  ;;  %v2563_v56 = vmul.f32 %v3897_v47, %v2398_v39 }
 0x1c2   : > { %v2565_v52 = vadd.f32 %v2563_v56, %v2556_v59 }
 0x1c3   : > { %v3899_v0 = vld [vmem:[%s6381_s3] ss:$0 sm:$0xff] }
 0x1c4   : > { %2578 = vst [vmem:[#allocation2] sm:$0xff] %v3899_v0  ;;  %2579 = vst [vmem:[#allocation2 + $0x8] sm:$0xff] %v3899_v0 }
 0x1c5 PF: > { %p3900_p8 = scmp.ne.s32.totalorder %s4926_s21, 1 }
 0x1c6   : > { %s4944_s28 = smov (!%p3900_p8), 1   ;;  %s4945_s29 = smov (!%p3900_p8), 127  }
 0x1ca   : > { %2589 = sbr.rel (%p3900_p8) target bundleno = 1094 (0x446), region = 52 }
 0x1cb   : > { %v2580_v18 = vld [vmem:[#allocation2] sm:$0xff]  ;;  %v2581_v1 = vld [vmem:[#allocation2 + $0x8] sm:$0xff] }
 0x1cc   : > { %v2582_v40 = vadd.f32 %v2580_v18, %v2565_v52  ;;  %v2583_v23 = vadd.f32 %v2581_v1, %v2566_v37 }
 0x1ce   : > { %2584 = vst [vmem:[#allocation2] sm:$0xff] %v2582_v40  ;;  %2585 = vst [vmem:[#allocation2 + $0x8] sm:$0xff] %v2583_v23 }
 0x1cf   : > { %v2621_v35 = vld [vmem:[%s6382_s4 + $0x78] sm:$0xff]  ;;  %v2620_v61 = vld [vmem:[%s6382_s4 + $0x70] sm:$0xff]  ;;  %v2619_v54 = vld [vmem:[%s6382_s4 + $0x68] sm:$0xff]  ;;  %vm4947_vm1 = vmmov 0   ;;  %vm3785_vm4 = vcmask 456704  }
 0x1d0   : > { %v5940_v4 = vand.u32 4294901760, %v2621_v35  ;;  %v2618_v49 = vld [vmem:[%s6382_s4 + $0x60] sm:$0xff]  ;;  %v5951_v53 = vand.u32 4294901760, %v2620_v61  ;;  %v5953_v55 = vand.u32 4294901760, %v2619_v54  ;;  %v2617_v14 = vld [vmem:[%s6382_s4 + $0x58] sm:$0xff]  ;;  %v2616_v46 = vld [vmem:[%s6382_s4 + $0x50] sm:$0xff] }
 0x1d1   : > { %v5955_v28 = vand.u32 4294901760, %v2618_v49  ;;  %v2615_v48 = vld [vmem:[%s6382_s4 + $0x48] sm:$0xff]  ;;  %v5971_v58 = vand.u32 4294901760, %v2617_v14  ;;  %v5973_v51 = vand.u32 4294901760, %v2616_v46  ;;  %v2614_v8 = vld [vmem:[%s6382_s4 + $0x40] sm:$0xff]  ;;  %v2613_v57 = vld [vmem:[%s6382_s4 + $0x38] sm:$0xff] }
 0x1d2   : > { %v5969_v15 = vsub.f32 %v2621_v35, %v5940_v4  ;;  %v5975_v16 = vand.u32 4294901760, %v2615_v48  ;;  %v5981_v11 = vsub.f32 %v2620_v61, %v5951_v53  ;;  %v5984_v3 = vsub.f32 %v2619_v54, %v5953_v55  ;;  %4605 = vmatprep.subr.mxu0 %v5940_v4  ;;  %v2612_v21 = vld [vmem:[%s6382_s4 + $0x30] sm:$0xff]  ;;  %v2611_v50 = vld [vmem:[%s6382_s4 + $0x28] sm:$0xff]  ;;  %v2610_v45 = vld [vmem:[%s6382_s4 + $0x20] sm:$0xff] }
 0x1d3   : > { %v5987_v29 = vsub.f32 %v2618_v49, %v5955_v28  ;;  %v5990_v25 = vand.u32 4294901760, %v2614_v8  ;;  %v5996_v63 = vsub.f32 %v2617_v14, %v5971_v58  ;;  %4606 = vmatpush3.msra.mxu0 %v5940_v4  ;;  %v6000_v31 = vsub.f32 %v2616_v46, %v5973_v51  ;;  %v2609_v38 = vld [vmem:[%s6382_s4 + $0x18] sm:$0xff]  ;;  %v2608_v52 = vld [vmem:[%s6382_s4 + $0x10] sm:$0xff]  ;;  %v2606_v14 = vld [vmem:[%s6382_s4] sm:$0xff] }
 0x1d4   : > { %v5993_v24 = vand.u32 4294901760, %v5969_v15  ;;  %v6003_v34 = vand.u32 4294901760, %v5981_v11  ;;  %v6006_v30 = vand.u32 4294901760, %v5984_v3  ;;  %4607 = vmatprep.subr.mxu0 %v5951_v53  ;;  %v6013_v36 = vsub.f32 %v2615_v48, %v5975_v16 }
 0x1d5   : > { %v2590_v26 = vld [vmem:[#allocation2] sm:$0xff]  ;;  %v2591_v6 = vld [vmem:[#allocation2 + $0x8] sm:$0xff]  ;;  %v6009_v9 = vand.u32 4294901760, %v5987_v29  ;;  %v6020_v13 = vand.u32 4294901760, %v5996_v63  ;;  %4608 = vmatpush3.msra.mxu0 %v5951_v53  ;;  %v6028_v60 = vsub.f32 %v2614_v8, %v5990_v25  ;;  %v6036_v17 = vand.u32 4294901760, %v6000_v31 }
 0x1d6   : > { %v5936_v43 = vmax.f32 %v2590_v26, 0.0  ;;  %v5938_v12 = vmax.f32 %v2591_v6, 0.0  ;;  %v2727_v33 = vsub.f32 %v5969_v15, %v5993_v24  ;;  %v2734_v5 = vsub.f32 %v5981_v11, %v6003_v34  ;;  %4609 = vmatprep.subr.mxu0 %v5953_v55  ;;  %v2607_v26 = vld [vmem:[%s6382_s4 + $0x8] sm:$0xff] }
 0x1d7   : > { %v2741_v7 = vsub.f32 %v5984_v3, %v6006_v30  ;;  %v2748_v42 = vsub.f32 %v5987_v29, %v6009_v9  ;;  %v6046_v27 = vand.u32 4294901760, %v6013_v36  ;;  %4610 = vmatpush3.msra.mxu0 %v5953_v55  ;;  %v2755_v47 = vsub.f32 %v5996_v63, %v6020_v13 }
 0x1d8   : > { %2594 = vrot.lane.b32.xlu0 %v5936_v43, %s4944_s28  ;;  %2600 = vrot.lane.b32.xlu1 %v5936_v43, %s4945_s29  ;;  %v2728_v32 = vand.u32 4294901760, %v2727_v33  ;;  %v2735_v19 = vand.u32 4294901760, %v2734_v5  ;;  %v6055_v10 = vand.u32 4294901760, %v2613_v57  ;;  %v6058_v41 = vand.u32 4294901760, %v6028_v60 }
 0x1d9   : > { %v2742_v62 = vand.u32 4294901760, %v2741_v7  ;;  %4611 = vmatprep.subr.mxu0 %v5955_v28  ;;  %v6061_v44 = vand.u32 4294901760, %v2612_v21  ;;  %v6063_v22 = vand.u32 4294901760, %v2611_v50  ;;  %v2749_v20 = vand.u32 4294901760, %v2748_v42 }
 0x1da   : > { %4640 = vmatprep.subr.mxu1 %v2728_v32  ;;  %4612 = vmatpush3.msra.mxu0 %v5955_v28  ;;  %v2762_v59 = vsub.f32 %v6000_v31, %v6036_v17  ;;  %v6072_v2 = vsub.f32 %v2613_v57, %v6055_v10  ;;  %v6074_v39 = vand.u32 4294901760, %v2610_v45  ;;  %v2769_v37 = vsub.f32 %v6013_v36, %v6046_v27 }
 0x1db   : > { %4641 = vmatpush3.msra.mxu1 %v2728_v32  ;;  %4613 = vmatprep.subr.mxu0 %v5971_v58  ;;  %v6080_v56 = vsub.f32 %v2612_v21, %v6061_v44  ;;  %v2756_v0 = vand.u32 4294901760, %v2755_v47  ;;  %v6090_v1 = vsub.f32 %v2611_v50, %v6063_v22  ;;  %v6092_v40 = vand.u32 4294901760, %v2609_v38 }
 0x1dc   : > { %2596 = vrot.lane.b32.xlu0 %v5938_v12, %s4944_s28  ;;  %2602 = vrot.lane.b32.xlu1 %v5938_v12, %s4945_s29  ;;  %v6086_v18 = vand.u32 4294901760, %v6072_v2  ;;  %v2776_v23 = vsub.f32 %v6028_v60, %v6058_v41  ;;  %v2763_v6 = vand.u32 4294901760, %v2762_v59  ;;  %v6105_v61 = vsub.f32 %v2610_v45, %v6074_v39 }
 0x1dd   : > { %4642 = vmatprep.subr.mxu1 %v2735_v19  ;;  %4614 = vmatpush3.msra.mxu0 %v5971_v58  ;;  %v6101_v35 = vand.u32 4294901760, %v6080_v56  ;;  %v6107_v54 = vand.u32 4294901760, %v2608_v52  ;;  %v2770_v49 = vand.u32 4294901760, %v2769_v37  ;;  %v6116_v48 = vand.u32 4294901760, %v6090_v1 }
 0x1de   : > { %4643 = vmatpush3.msra.mxu1 %v2735_v19  ;;  %4615 = vmatprep.subr.mxu0 %v5973_v51  ;;  %v2783_v46 = vsub.f32 %v6072_v2, %v6086_v18  ;;  %v6120_v8 = vsub.f32 %v2609_v38, %v6092_v40  ;;  %v6122_v33 = vand.u32 4294901760, %v2607_v26  ;;  %v2777_v5 = vand.u32 4294901760, %v2776_v23 }
 0x1df   : > { %4644 = vmatprep.subr.mxu1 %v2742_v62  ;;  %4616 = vmatpush3.msra.mxu0 %v5973_v51  ;;  %v2790_v7 = vsub.f32 %v6080_v56, %v6101_v35  ;;  %v6128_v57 = vand.u32 4294901760, %v6105_v61  ;;  %v6132_v32 = vsub.f32 %v2608_v52, %v6107_v54  ;;  %v6134_v42 = vand.u32 4294901760, %v2606_v14 }
 0x1e0   : > { %4645 = vmatpush3.msra.mxu1 %v2742_v62  ;;  %4617 = vmatprep.subr.mxu0 %v5975_v16  ;;  %v2784_v21 = vand.u32 4294901760, %v2783_v46  ;;  %v2797_v50 = vsub.f32 %v6090_v1, %v6116_v48  ;;  %v6140_v19 = vand.u32 4294901760, %v6120_v8  ;;  %v6144_v45 = vsub.f32 %v2607_v26, %v6122_v33 }
 0x1e1   : > { %4646 = vmatprep.subr.mxu1 %v2749_v20  ;;  %4618 = vmatpush3.msra.mxu0 %v5975_v16  ;;  %v2791_v62 = vand.u32 4294901760, %v2790_v7  ;;  %v2804_v47 = vsub.f32 %v6105_v61, %v6128_v57  ;;  %v6150_v38 = vand.u32 4294901760, %v6132_v32 }
 0x1e2   : > { %4647 = vmatpush3.msra.mxu1 %v2749_v20  ;;  %4619 = vmatprep.subr.mxu0 %v5990_v25  ;;  %v6154_v20 = vsub.f32 %v2606_v14, %v6134_v42  ;;  %v2798_v59 = vand.u32 4294901760, %v2797_v50  ;;  %v2811_v37 = vsub.f32 %v6120_v8, %v6140_v19  ;;  %v6160_v52 = vand.u32 4294901760, %v6144_v45 }
 0x1e3   : > { %4648 = vmatprep.subr.mxu1 %v2756_v0  ;;  %4620 = vmatpush3.msra.mxu0 %v5990_v25  ;;  %v2818_v23 = vsub.f32 %v6132_v32, %v6150_v38 }
 0x1e4   : > { %4649 = vmatpush3.msra.mxu1 %v2756_v0  ;;  %4621 = vmatprep.subr.mxu0 %v6055_v10  ;;  %v2805_v0 = vand.u32 4294901760, %v2804_v47  ;;  %v6167_v26 = vand.u32 4294901760, %v6154_v20 }
 0x1e5   : > { %4650 = vmatprep.subr.mxu1 %v2763_v6  ;;  %4622 = vmatpush3.msra.mxu0 %v6055_v10  ;;  %v2819_v14 = vand.u32 4294901760, %v2818_v23 }
 0x1e6   : > { %4651 = vmatpush3.msra.mxu1 %v2763_v6  ;;  %4623 = vmatprep.subr.mxu0 %v6061_v44  ;;  %v2812_v6 = vand.u32 4294901760, %v2811_v37  ;;  %v2832_v46 = vsub.f32 %v6154_v20, %v6167_v26 }
 0x1e7   : > { %4652 = vmatprep.subr.mxu1 %v2770_v49  ;;  %4624 = vmatpush3.msra.mxu0 %v6061_v44 }
 0x1e8   : > { %4653 = vmatpush3.msra.mxu1 %v2770_v49  ;;  %4625 = vmatprep.subr.mxu0 %v6063_v22  ;;  %v2825_v49 = vsub.f32 %v6144_v45, %v6160_v52  ;;  %v2833_v7 = vand.u32 4294901760, %v2832_v46 }
 0x1e9   : > { %4654 = vmatprep.subr.mxu1 %v2777_v5  ;;  %4626 = vmatpush3.msra.mxu0 %v6063_v22 }
 0x1ea   : > { %4655 = vmatpush3.msra.mxu1 %v2777_v5  ;;  %4627 = vmatprep.subr.mxu0 %v6074_v39  ;;  %v2826_v5 = vand.u32 4294901760, %v2825_v49 }
 0x1eb   : > { %4656 = vmatprep.subr.mxu1 %v2784_v21  ;;  %4628 = vmatpush3.msra.mxu0 %v6074_v39 }
 0x1ec   : > { %4657 = vmatpush3.msra.mxu1 %v2784_v21  ;;  %4629 = vmatprep.subr.mxu0 %v6092_v40 }
 0x1ed   : > { %4658 = vmatprep.subr.mxu1 %v2791_v62  ;;  %4630 = vmatpush3.msra.mxu0 %v6092_v40 }
 0x1ee   : > { %4659 = vmatpush3.msra.mxu1 %v2791_v62  ;;  %4631 = vmatprep.subr.mxu0 %v6107_v54 }
 0x1ef   : > { %4660 = vmatprep.subr.mxu1 %v2798_v59  ;;  %4632 = vmatpush3.msra.mxu0 %v6107_v54 }
 0x1f0   : > { %4661 = vmatpush3.msra.mxu1 %v2798_v59  ;;  %4633 = vmatprep.subr.mxu0 %v6122_v33 }
 0x1f1   : > { %4662 = vmatprep.subr.mxu1 %v2805_v0  ;;  %4634 = vmatpush3.msra.mxu0 %v6122_v33 }
 0x1f2   : > { %4663 = vmatpush3.msra.mxu1 %v2805_v0  ;;  %4635 = vmatprep.subr.mxu0 %v6134_v42 }
 0x1f3   : > { %4664 = vmatprep.subr.mxu1 %v2812_v6  ;;  %4636 = vmatpush3.msra.mxu0 %v6134_v42 }
 0x1f4   : > { %4665 = vmatpush3.msra.mxu1 %v2812_v6  ;;  %4675 = vmatprep.subr.mxu0 %v5969_v15 }
 0x1f5   : > { %4666 = vmatprep.subr.mxu1 %v2819_v14 }
 0x1f6   : > { %4667 = vmatpush3.msra.mxu1 %v2819_v14 }
 0x1f7   : > { %4668 = vmatprep.subr.mxu1 %v2826_v5 }
 0x1f8   : > { %4669 = vmatpush3.msra.mxu1 %v2826_v5 }
 0x1f9   : > { %4670 = vmatprep.subr.mxu1 %v2833_v7 }
 0x1fa   : > { %4671 = vmatpush3.msra.mxu1 %v2833_v7 }
 0x1fb   : > { %4710 = vmatprep.subr.mxu1 %v5940_v4 }
 0x24a   : > { %v2595_v21 = vpop.permute.xlu0 %2594  ;;  %v2601_v50 = vpop.permute.xlu1 %2600 }
 0x24b   : > { %v2598_v62 = vmax.f32 %v5936_v43, %v2595_v21 }
 0x24d   : > { %v2604_v47 = vmax.f32 %v2598_v62, %v2601_v50 }
 0x24e   : > { %v2597_v59 = vpop.permute.xlu0 %2596  ;;  %v2603_v37 = vpop.permute.xlu1 %2602 }
 0x24f   : > { %v6184_v0 = vand.u32 4294901760, %v2604_v47  ;;  %v2599_v23 = vmax.f32 %v5938_v12, %v2597_v59 }
 0x251   : > { %v2704_v6 = vsub.f32 %v2604_v47, %v6184_v0  ;;  %v2605_v49 = vmax.f32 %v2599_v23, %v2603_v37  ;;  %4672 = vmatprep.mubr.f32.mxu1 %v6184_v0 }
 0x253   : > { %v6189_v14 = vand.u32 4294901760, %v2605_v49  ;;  %v2705_v46 = vand.u32 4294901760, %v2704_v6 }
 0x255   : > { %v6192_v5 = vsub.f32 %v2605_v49, %v6189_v14  ;;  %4673 = vmatmul.mubr.f32.vlgmr.msra.gmra.mxu1 %v6189_v14  ;;  %v2706_v43 = vsub.f32 %v2704_v6, %v2705_v46 }
 0x256   : > { %4711 = vmatpush3.msra.mxu1 %v5940_v4  ;;  %4742 = vmatprep.mubr.f32.mxu1 %v2705_v46 }
 0x257   : > { %4712 = vmatprep.subr.mxu1 %v5951_v53  ;;  %v2707_v12 = vand.u32 4294901760, %v2706_v43  ;;  %v2715_v7 = vand.u32 4294901760, %v6192_v5 }
 0x258   : > { %4713 = vmatpush3.msra.mxu1 %v5951_v53 }
 0x259   : > { %4714 = vmatprep.subr.mxu1 %v5953_v55  ;;  %4637 = vmatprep.mubr.f32.mxu0 %v2707_v12  ;;  %v2716_v21 = vsub.f32 %v6192_v5, %v2715_v7 }
 0x25a   : > { %4715 = vmatpush3.msra.mxu1 %v5953_v55 }
 0x25b   : > { %4716 = vmatprep.subr.mxu1 %v5955_v28  ;;  %v2717_v50 = vand.u32 4294901760, %v2716_v21 }
 0x25c   : > { %4717 = vmatpush3.msra.mxu1 %v5955_v28 }
 0x25d   : > { %4718 = vmatprep.subr.mxu1 %v5971_v58  ;;  %4638 = vmatmul.mubr.f32.vlgmr.msra.gmra.mxu0 %v2717_v50 }
 0x25e   : > { %4676 = vmatpush3.msra.mxu0 %v5969_v15  ;;  %4719 = vmatpush3.msra.mxu1 %v5971_v58 }
 0x25f   : > { %4677 = vmatprep.subr.mxu0 %v5981_v11  ;;  %4707 = vmatprep.mubr.f32.mxu0 %v2704_v6 }
 0x260   : > { %4720 = vmatprep.subr.mxu1 %v5973_v51  ;;  %4678 = vmatpush3.msra.mxu0 %v5981_v11 }
 0x261   : > { %4721 = vmatpush3.msra.mxu1 %v5973_v51  ;;  %4679 = vmatprep.subr.mxu0 %v5984_v3 }
 0x262   : > { %4722 = vmatprep.subr.mxu1 %v5975_v16  ;;  %4680 = vmatpush3.msra.mxu0 %v5984_v3 }
 0x263   : > { %4723 = vmatpush3.msra.mxu1 %v5975_v16  ;;  %4681 = vmatprep.subr.mxu0 %v5987_v29 }
 0x264   : > { %4724 = vmatprep.subr.mxu1 %v5990_v25  ;;  %4682 = vmatpush3.msra.mxu0 %v5987_v29 }
 0x265   : > { %4725 = vmatpush3.msra.mxu1 %v5990_v25  ;;  %4683 = vmatprep.subr.mxu0 %v5996_v63 }
 0x266   : > { %4726 = vmatprep.subr.mxu1 %v6055_v10  ;;  %4684 = vmatpush3.msra.mxu0 %v5996_v63 }
 0x267   : > { %4727 = vmatpush3.msra.mxu1 %v6055_v10  ;;  %4685 = vmatprep.subr.mxu0 %v6000_v31 }
 0x268   : > { %4728 = vmatprep.subr.mxu1 %v6061_v44  ;;  %4686 = vmatpush3.msra.mxu0 %v6000_v31 }
 0x269   : > { %4729 = vmatpush3.msra.mxu1 %v6061_v44  ;;  %4687 = vmatprep.subr.mxu0 %v6013_v36 }
 0x26a   : > { %4730 = vmatprep.subr.mxu1 %v6063_v22  ;;  %4688 = vmatpush3.msra.mxu0 %v6013_v36 }
 0x26b   : > { %4731 = vmatpush3.msra.mxu1 %v6063_v22  ;;  %4689 = vmatprep.subr.mxu0 %v6028_v60 }
 0x26c   : > { %4732 = vmatprep.subr.mxu1 %v6074_v39  ;;  %4690 = vmatpush3.msra.mxu0 %v6028_v60 }
 0x26d   : > { %4733 = vmatpush3.msra.mxu1 %v6074_v39  ;;  %4691 = vmatprep.subr.mxu0 %v6072_v2 }
 0x26e   : > { %4734 = vmatprep.subr.mxu1 %v6092_v40  ;;  %4692 = vmatpush3.msra.mxu0 %v6072_v2 }
 0x26f   : > { %4735 = vmatpush3.msra.mxu1 %v6092_v40  ;;  %4693 = vmatprep.subr.mxu0 %v6080_v56 }
 0x270   : > { %4736 = vmatprep.subr.mxu1 %v6107_v54  ;;  %4694 = vmatpush3.msra.mxu0 %v6080_v56 }
 0x271   : > { %4737 = vmatpush3.msra.mxu1 %v6107_v54  ;;  %4695 = vmatprep.subr.mxu0 %v6090_v1 }
 0x272   : > { %4738 = vmatprep.subr.mxu1 %v6122_v33  ;;  %4696 = vmatpush3.msra.mxu0 %v6090_v1 }
 0x273   : > { %4739 = vmatpush3.msra.mxu1 %v6122_v33  ;;  %4697 = vmatprep.subr.mxu0 %v6105_v61 }
 0x274   : > { %4740 = vmatprep.subr.mxu1 %v6134_v42  ;;  %4698 = vmatpush3.msra.mxu0 %v6105_v61 }
 0x275   : > { %4741 = vmatpush3.msra.mxu1 %v6134_v42  ;;  %4699 = vmatprep.subr.mxu0 %v6120_v8 }
 0x276   : > { %4743 = vmatmul.mubr.f32.vlgmr.msra.gmra.mxu1 %v2715_v7  ;;  %4780 = vmatprep.subr.mxu1 %v5940_v4 }
 0x277   : > { %4700 = vmatpush3.msra.mxu0 %v6120_v8  ;;  %4781 = vmatpush3.msra.mxu1 %v5940_v4  ;;  %v4946_v4 = vmov 0.0  }
 0x278   : > { %4812 = vmatprep.mubr.f32.mxu1 %v6184_v0  ;;  %4701 = vmatprep.subr.mxu0 %v6132_v32 }
 0x279   : > { %4782 = vmatprep.subr.mxu1 %v5951_v53  ;;  %4702 = vmatpush3.msra.mxu0 %v6132_v32 }
 0x27a   : > { %4783 = vmatpush3.msra.mxu1 %v5951_v53  ;;  %4703 = vmatprep.subr.mxu0 %v6144_v45 }
 0x27b   : > { %4784 = vmatprep.subr.mxu1 %v5953_v55  ;;  %4704 = vmatpush3.msra.mxu0 %v6144_v45 }
 0x27c   : > { %4785 = vmatpush3.msra.mxu1 %v5953_v55  ;;  %4705 = vmatprep.subr.mxu0 %v6154_v20 }
 0x27d   : > { %4786 = vmatprep.subr.mxu1 %v5955_v28  ;;  %4706 = vmatpush3.msra.mxu0 %v6154_v20 }
 0x27e   : > { %4787 = vmatpush3.msra.mxu1 %v5955_v28  ;;  %4708 = vmatmul.mubr.f32.vlgmr.msra.gmra.mxu0 %v6192_v5 }
 0x27f   : > { %4745 = vmatprep.subr.mxu0 %v5993_v24  ;;  %4788 = vmatprep.subr.mxu1 %v5971_v58 }
 0x280   : > { %4746 = vmatpush3.msra.mxu0 %v5993_v24  ;;  %4777 = vmatprep.mubr.f32.mxu0 %v6184_v0 }
 0x281   : > { %4789 = vmatpush3.msra.mxu1 %v5971_v58  ;;  %4747 = vmatprep.subr.mxu0 %v6003_v34 }
 0x282   : > { %4790 = vmatprep.subr.mxu1 %v5973_v51  ;;  %4748 = vmatpush3.msra.mxu0 %v6003_v34  ;;  %v3308_v34 = vlaneseq }
 0x283   : > { %4791 = vmatpush3.msra.mxu1 %v5973_v51  ;;  %4749 = vmatprep.subr.mxu0 %v6006_v30 }
 0x284   : > { %4792 = vmatprep.subr.mxu1 %v5975_v16  ;;  %4750 = vmatpush3.msra.mxu0 %v6006_v30 }
 0x285   : > { %4793 = vmatpush3.msra.mxu1 %v5975_v16  ;;  %4751 = vmatprep.subr.mxu0 %v6009_v9  ;;  %v3322_v16 = vld [vmem:[%s6383_s5] sm:$0x7f] }
 0x286   : > { %4794 = vmatprep.subr.mxu1 %v5990_v25  ;;  %4752 = vmatpush3.msra.mxu0 %v6009_v9  ;;  %v3324_v24 = vsel %vm334_vm0, %v3322_v16, 0 }
 0x287   : > { %4795 = vmatpush3.msra.mxu1 %v5990_v25  ;;  %4753 = vmatprep.subr.mxu0 %v6020_v13  ;;  %v6338_v9 = vand.u32 4294901760, %v3324_v24 }
 0x288   : > { %4796 = vmatprep.subr.mxu1 %v6055_v10  ;;  %4754 = vmatpush3.msra.mxu0 %v6020_v13 }
 0x289   : > { %4797 = vmatpush3.msra.mxu1 %v6055_v10  ;;  %4755 = vmatprep.subr.mxu0 %v6036_v17  ;;  %v3309_v10 = vshrl.u32 %v3308_v34, 7 }
 0x28a   : > { %4798 = vmatprep.subr.mxu1 %v6061_v44  ;;  %4756 = vmatpush3.msra.mxu0 %v6036_v17 }
 0x28b   : > { %4799 = vmatpush3.msra.mxu1 %v6061_v44  ;;  %4757 = vmatprep.subr.mxu0 %v6046_v27  ;;  %vm3310_vm2 = vcmp.lt.s32.totalorder %v3309_v10, 1  ;;  %vm3317_vm3 = vcmp.lt.s32.totalorder %v3309_v10, 7 }
 0x28c   : > { %4800 = vmatprep.subr.mxu1 %v6063_v22  ;;  %4758 = vmatpush3.msra.mxu0 %v6046_v27 }
 0x28d   : > { %4801 = vmatpush3.msra.mxu1 %v6063_v22  ;;  %4759 = vmatprep.subr.mxu0 %v6058_v41  ;;  %v3394_v22 = vsub.f32 %v3324_v24, %v6338_v9 }
 0x28e   : > { %4802 = vmatprep.subr.mxu1 %v6074_v39  ;;  %4760 = vmatpush3.msra.mxu0 %v6058_v41 }
 0x28f   : > { %4803 = vmatpush3.msra.mxu1 %v6074_v39  ;;  %4761 = vmatprep.subr.mxu0 %v6086_v18 }
 0x290   : > { %4804 = vmatprep.subr.mxu1 %v6092_v40  ;;  %4762 = vmatpush3.msra.mxu0 %v6086_v18 }
 0x291   : > { %4805 = vmatpush3.msra.mxu1 %v6092_v40  ;;  %4763 = vmatprep.subr.mxu0 %v6101_v35  ;;  %v3395_v40 = vand.u32 4294901760, %v3394_v22 }
 0x292   : > { %4806 = vmatprep.subr.mxu1 %v6107_v54  ;;  %4764 = vmatpush3.msra.mxu0 %v6101_v35 }
 0x293   : > { %4807 = vmatpush3.msra.mxu1 %v6107_v54  ;;  %4765 = vmatprep.subr.mxu0 %v6116_v48  ;;  %v3396_v32 = vsub.f32 %v3394_v22, %v3395_v40 }
 0x294   : > { %4808 = vmatprep.subr.mxu1 %v6122_v33  ;;  %4766 = vmatpush3.msra.mxu0 %v6116_v48 }
 0x295   : > { %4809 = vmatpush3.msra.mxu1 %v6122_v33  ;;  %4767 = vmatprep.subr.mxu0 %v6128_v57  ;;  %v3397_v20 = vand.u32 4294901760, %v3396_v32 }
 0x296   : > { %4810 = vmatprep.subr.mxu1 %v6134_v42  ;;  %4768 = vmatpush3.msra.mxu0 %v6128_v57 }
 0x297   : > { %4811 = vmatpush3.msra.mxu1 %v6134_v42  ;;  %4769 = vmatprep.subr.mxu0 %v6140_v19 }
 0x298   : > { %4813 = vmatmul.mubr.f32.vlgmr.msra.gmra.mxu1 %v6189_v14  ;;  %4770 = vmatpush3.msra.mxu0 %v6140_v19 }
 0x299   : > { %4771 = vmatprep.subr.mxu0 %v6150_v38  ;;  %4822 = vmatprep.subr.mxu1 %v4946_v4 }
 0x29a   : > { %4772 = vmatpush3.msra.mxu0 %v6150_v38  ;;  %4826 = vmatprep.mubr.msk.f32.mxu1 %vm4947_vm1, %v4946_v4 }
 0x29b   : > { %4773 = vmatprep.subr.mxu0 %v6160_v52 }
 0x29c   : > { %4774 = vmatpush3.msra.mxu0 %v6160_v52 }
 0x29d   : > { %4775 = vmatprep.subr.mxu0 %v6167_v26 }
 0x29e   : > { %4776 = vmatpush3.msra.mxu0 %v6167_v26 }
 0x29f   : > { %4778 = vmatmul.mubr.f32.vlgmr.msra.gmra.mxu0 %v6189_v14  ;;  %4815 = vmatprep.subr.mxu0 %v4946_v4 }
 0x2a0   : > { %4819 = vmatprep.mubr.msk.f32.mxu0 %vm4947_vm1, %v4946_v4 }
 0x315   : > { %v4674_v55 = vpop.f32.mrf.mxu1 }
 0x317   : > { %v2870_v58 = vpop.f32.mrf.mxu1 }
 0x31d   : > { %v4639_v53 = vpop.f32.mrf.mxu0 }
 0x31e   : > { %v2877_v51 = vadd.f32 %v4674_v55, %v4639_v53 }
 0x31f   : > { %v2709_v28 = vpop.f32.mrf.mxu0 }
 0x320   : > { %v2871_v29 = vadd.f32 %v2870_v58, %v2709_v28 }
 0x336   : > { %v4744_v11 = vpop.f32.mrf.mxu1 }
 0x338   : > { %v3076_v31 = vpop.f32.mrf.mxu1 }
 0x33e   : > { %v4709_v15 = vpop.f32.mrf.mxu0 }
 0x33f   : > { %v2988_v25 = vadd.f32 %v4709_v15, %v2877_v51 }
 0x340   : > { %v2980_v3 = vpop.f32.mrf.mxu0 }
 0x341   : > { %v2981_v63 = vadd.f32 %v2980_v3, %v2871_v29  ;;  %v3085_v30 = vadd.f32 %v4744_v11, %v2988_v25 }
 0x343   : > { %v3077_v17 = vadd.f32 %v3076_v31, %v2981_v63 }
 0x358   : > { %v4814_v36 = vpop.f32.mrf.mxu1 }
 0x35a   : > { %v3296_v2 = vpop.f32.mrf.mxu1 }
 0x35f   : > { %v4779_v13 = vpop.f32.mrf.mxu0 }
 0x360   : > { %v3210_v60 = vadd.f32 %v4779_v13, %v3085_v30 }
 0x361   : > { %v3203_v27 = vpop.f32.mrf.mxu0 }
 0x362   : > { %v3303_v41 = vadd.f32 %v4814_v36, %v3210_v60  ;;  %v3204_v44 = vadd.f32 %v3203_v27, %v3077_v17 }
 0x364   : > { %v3297_v39 = vadd.f32 %v3296_v2, %v3204_v44  ;;  %v3307_v56 = vrot.slane %v3303_v41, 7  ;;  %v3316_v35 = vrot.slane %v3303_v41, 1 }
 0x366   : > { %v3306_v18 = vrot.slane %v3297_v39, 7  ;;  %v3315_v1 = vrot.slane %v3297_v39, 1 }
 0x368   : > { %v3311_v61 = vsel %vm3310_vm2, %v3306_v18, %v3307_v56  ;;  %v3312_v54 = vsel %vm3310_vm2, %v3307_v56, %v3306_v18  ;;  %v3318_v33 = vsel %vm3317_vm3, %v3315_v1, %v3316_v35  ;;  %v3319_v57 = vsel %vm3317_vm3, %v3316_v35, %v3315_v1 }
 0x369   : > { %v3313_v48 = vmax.f32 %v3297_v39, %v3312_v54  ;;  %v3314_v8 = vmax.f32 %v3303_v41, %v3311_v61 }
 0x36b   : > { %v3320_v42 = vmax.f32 %v3313_v48, %v3318_v33  ;;  %v3321_v19 = vmax.f32 %v3314_v8, %v3319_v57 }
 0x36d   : > { %v3355_v45 = vand.u32 4294901760, %v3321_v19  ;;  %v3358_v38 = vand.u32 4294901760, %v3320_v42 }
 0x36f   : > { %4816 = vmatpush3.msra.mxu0 %v3355_v45  ;;  %v3433_v52 = vsub.f32 %v3321_v19, %v3355_v45  ;;  %v3440_v26 = vsub.f32 %v3320_v42, %v3358_v38 }
 0x370   : > { %4817 = vmatprep.subr.mxu0 %v4946_v4 }
 0x371   : > { %4818 = vmatpush3.msra.mxu0 %v3358_v38  ;;  %v3434_v62 = vand.u32 4294901760, %v3433_v52  ;;  %v3441_v47 = vand.u32 4294901760, %v3440_v26 }
 0x372   : > { %4829 = vmatprep.subr.mxu0 %v4946_v4  ;;  %4820 = vmatmul.mubr.f32.vlgmr.msra.gmra.mxu0 %v3397_v20 }
 0x373   : > { %4830 = vmatpush3.msra.mxu0 %v3433_v52  ;;  %4833 = vmatprep.mubr.msk.f32.mxu0 %vm4947_vm1, %v4946_v4  ;;  %v3435_v59 = vsub.f32 %v3433_v52, %v3434_v62  ;;  %v3442_v37 = vsub.f32 %v3440_v26, %v3441_v47 }
 0x374   : > { %4831 = vmatprep.subr.mxu0 %v4946_v4 }
 0x375   : > { %4832 = vmatpush3.msra.mxu0 %v3440_v26  ;;  %v3436_v0 = vand.u32 4294901760, %v3435_v59  ;;  %v3443_v23 = vand.u32 4294901760, %v3442_v37 }
 0x376   : > { %4843 = vmatprep.subr.mxu0 %v4946_v4  ;;  %4834 = vmatmul.mubr.f32.vlgmr.msra.gmra.mxu0 %v3394_v22 }
 0x377   : > { %4823 = vmatpush3.msra.mxu1 %v3436_v0  ;;  %4844 = vmatpush3.msra.mxu0 %v3434_v62 }
 0x378   : > { %4824 = vmatprep.subr.mxu1 %v4946_v4  ;;  %4845 = vmatprep.subr.mxu0 %v4946_v4 }
 0x379   : > { %4825 = vmatpush3.msra.mxu1 %v3443_v23  ;;  %4846 = vmatpush3.msra.mxu0 %v3441_v47 }
 0x37a   : > { %4827 = vmatmul.mubr.f32.vlgmr.msra.gmra.mxu1 %v6338_v9  ;;  %4836 = vmatprep.subr.mxu1 %v4946_v4 }
 0x37b   : > { %4837 = vmatpush3.msra.mxu1 %v3355_v45  ;;  %4840 = vmatprep.mubr.msk.f32.mxu1 %vm4947_vm1, %v4946_v4 }
 0x37c   : > { %4838 = vmatprep.subr.mxu1 %v4946_v4  ;;  %4847 = vmatprep.mubr.msk.f32.mxu0 %vm4947_vm1, %v4946_v4 }
 0x37d   : > { %4839 = vmatpush3.msra.mxu1 %v3358_v38  ;;  %4848 = vmatmul.mubr.f32.vlgmr.msra.gmra.mxu0 %v6338_v9 }
 0x37e   : > { %4841 = vmatmul.mubr.f32.vlgmr.msra.gmra.mxu1 %v3395_v40  ;;  %4850 = vmatprep.subr.mxu1 %v4946_v4 }
 0x37f   : > { %4851 = vmatpush3.msra.mxu1 %v3355_v45  ;;  %4854 = vmatprep.mubr.msk.f32.mxu1 %vm4947_vm1, %v4946_v4 }
 0x380   : > { %4852 = vmatprep.subr.mxu1 %v4946_v4 }
 0x381   : > { %4853 = vmatpush3.msra.mxu1 %v3358_v38 }
 0x382   : > { %4855 = vmatmul.mubr.f32.vlgmr.msra.gmra.mxu1 %v6338_v9 }
 0x432   : > { %v3399_v6 = vpop.f32.mrf.mxu0 }
 0x434   : > { %v4821_v49 = vpop.f32.mrf.mxu0 }
 0x436   : > { %v3556_v14 = vpop.f32.mrf.mxu0 }
 0x438   : > { %v4835_v46 = vpop.f32.mrf.mxu0 }
 0x43a   : > { %v3480_v5 = vpop.f32.mrf.mxu1 }
 0x43b   : > { %v3481_v43 = vadd.f32 %v3480_v5, %v3399_v6 }
 0x43c   : > { %v4828_v12 = vpop.f32.mrf.mxu1 }
 0x43d   : > { %v3557_v7 = vadd.f32 %v3556_v14, %v3481_v43  ;;  %v3708_v21 = vpop.f32.mrf.mxu0 }
 0x43e   : > { %v3631_v50 = vpop.f32.mrf.mxu1 }
 0x43f   : > { %v3632_v53 = vadd.f32 %v3631_v50, %v3557_v7  ;;  %v4849_v55 = vpop.f32.mrf.mxu0 }
 0x440   : > { %v4842_v28 = vpop.f32.mrf.mxu1 }
 0x441   : > { %v3709_v15 = vadd.f32 %v3708_v21, %v3632_v53 }
 0x442   : > { %v3781_v58 = vpop.f32.mrf.mxu1 }
 0x443   : > { %v3782_v4 = vadd.f32 %v3781_v58, %v3709_v15 }
 0x444   : > { %v4856_v51 = vpop.f32.mrf.mxu1 }
 0x445   : > { %3786 = vst.msk [vmem:[%s5048_s14] sm:$0x7f] %vm3785_vm4, %v3782_v4 }
 0x446 PF: > { %s16_s25 = sadd.s32 1, %s4942_s25   ;;  %s6549_s21 = smov %s4934_s23 }
 0x447   : > { %p13_p9 = scmp.ge.s32.totalorder %s16_s25, 6   ;;  %s6550_s22 = smov %s4938_s24 }
 0x448   : > { %s6551_s23 = smov %s6554_s26  ;;  %s6552_s24 = smov %s6558_s27 }
 0x449   :  { %15 = sbr.rel (!%p13_p9) target bundleno = 3 (0x3), region = 85 }

</bundles_post_ra>
